<compile_context>
chip_gen: v6e
topology: v6e:2x2x1
jax: 0.10.0
libtpu: 0.0.40
codegen_flags: <defaults>
</compile_context>

<pallas_src>
import functools

import jax
import jax.numpy as jnp
from jax import lax
from jax.experimental import pallas as pl
from jax.experimental.pallas import tpu as pltpu

BN_EPS = 1e-5


def _round_up(x, m):
    return ((x + m - 1) // m) * m


# ---------------------------- Pallas kernels ----------------------------

def _mm_bias_kernel(x_ref, w_ref, b_ref, o_ref, acc_ref, *, relu):
    """Tiled (TM,TK)@(TK,TN) matmul, f32 accum, epilogue = +bias (+ReLU)."""
    @pl.when(pl.program_id(2) == 0)
    def _():
        acc_ref[...] = jnp.zeros_like(acc_ref)

    acc_ref[...] += jnp.dot(x_ref[...], w_ref[...],
                            preferred_element_type=jnp.float32)

    @pl.when(pl.program_id(2) == pl.num_programs(2) - 1)
    def _():
        out = acc_ref[...] + b_ref[...]
        if relu:
            out = jnp.maximum(out, 0.0)
        o_ref[...] = out.astype(o_ref.dtype)


def _mm_bias_add_relu_kernel(x_ref, w_ref, b_ref, r_ref, o_ref, acc_ref):
    """Same matmul, epilogue = +bias + residual + ReLU (BasicBlock tail)."""
    @pl.when(pl.program_id(2) == 0)
    def _():
        acc_ref[...] = jnp.zeros_like(acc_ref)

    acc_ref[...] += jnp.dot(x_ref[...], w_ref[...],
                            preferred_element_type=jnp.float32)

    @pl.when(pl.program_id(2) == pl.num_programs(2) - 1)
    def _():
        out = acc_ref[...] + b_ref[...] + r_ref[...]
        o_ref[...] = jnp.maximum(out, 0.0).astype(o_ref.dtype)


# ------------------------------ glue (JAX) ------------------------------

def _im2col(x, k, stride, pad):
    """x: NHWC -> (N, OH, OW, k*k*C) patches, (kh, kw, cin) channel order."""
    N, H, W, C = x.shape
    if pad:
        x = jnp.pad(x, ((0, 0), (pad, pad), (pad, pad), (0, 0)))
    OH = (H + 2 * pad - k) // stride + 1
    OW = (W + 2 * pad - k) // stride + 1
    patches = [x[:, i:i + stride * OH:stride, j:j + stride * OW:stride, :]
               for i in range(k) for j in range(k)]
    cols = jnp.concatenate(patches, axis=-1)
    return cols, OH, OW


def conv_bn(x, p, *, stride, relu=True, residual=None, tm_cap=256):
    """Conv2d(bias=False) + folded eval-BN [+ residual] [+ ReLU].

    x: (N, H, W, Cin) NHWC float32.
    p: prepped params {"w": (Kp,Coutp) bf16, "b": (1,Coutp) f32, "k", "pad",
       "cout"} produced once by prepare_conv_bn().
    """
    N, H, W, Cin = x.shape
    k, pad, cout = p["k"], p["pad"], p["cout"]
    wmat, bias = p["w"], p["b"]
    Kp, Coutp = wmat.shape

    cols, OH, OW = _im2col(x, k, stride, pad)
    M = N * OH * OW
    K = k * k * Cin
    cols = cols.reshape(M, K).astype(jnp.bfloat16)

    TM = min(tm_cap, _round_up(M, 8))
    TN = min(128, Coutp)
    TK = min(128, Kp)
    Mp = _round_up(M, TM)

    # Zero-pad M (tile alignment) and K (matches the zero-padded weight rows).
    cols = jnp.pad(cols, ((0, Mp - M), (0, Kp - K)))

    in_specs = [
        pl.BlockSpec((TM, TK), lambda i, j, kk: (i, kk)),   # im2col tile
        pl.BlockSpec((TK, TN), lambda i, j, kk: (kk, j)),   # weight tile
        pl.BlockSpec((1, TN), lambda i, j, kk: (0, j)),     # folded BN bias
    ]
    args = [cols, wmat, bias]

    if residual is None:
        kernel = functools.partial(_mm_bias_kernel, relu=relu)
    else:
        res = residual.reshape(M, cout).astype(jnp.float32)
        res = jnp.pad(res, ((0, Mp - M), (0, Coutp - cout)))
        in_specs.append(pl.BlockSpec((TM, TN), lambda i, j, kk: (i, j)))
        args.append(res)
        kernel = _mm_bias_add_relu_kernel

    flops = 2 * Mp * Kp * Coutp
    bytes_accessed = (Mp * Kp * 2 + Kp * Coutp * 2 + Mp * Coutp * 4
                      + (Mp * Coutp * 4 if residual is not None else 0))

    out = pl.pallas_call(
        kernel,
        grid=(Mp // TM, Coutp // TN, Kp // TK),
        in_specs=in_specs,
        out_specs=pl.BlockSpec((TM, TN), lambda i, j, kk: (i, j)),
        out_shape=jax.ShapeDtypeStruct((Mp, Coutp), jnp.float32),
        scratch_shapes=[pltpu.VMEM((TM, TN), jnp.float32)],
        compiler_params=pltpu.CompilerParams(
            dimension_semantics=("parallel", "parallel", "arbitrary")),
        cost_estimate=pl.CostEstimate(flops=flops, transcendentals=0,
                                      bytes_accessed=bytes_accessed),
    )(*args)

    return out[:M, :cout].reshape(N, OH, OW, cout)


# --------------------- parameter init / preparation ---------------------

def _kaiming_conv(key, cout, cin, k):
    fan_out = cout * k * k
    return jax.random.normal(key, (cout, cin, k, k), jnp.float32) * (2.0 / fan_out) ** 0.5


def _bn_init(key, c):
    kg, kb, km, kv = jax.random.split(key, 4)
    gamma = 1.0 + 0.1 * jax.random.normal(kg, (c,), jnp.float32)
    beta = 0.1 * jax.random.normal(kb, (c,), jnp.float32)
    mean = 0.1 * jax.random.normal(km, (c,), jnp.float32)
    var = jnp.abs(1.0 + 0.1 * jax.random.normal(kv, (c,), jnp.float32))
    return (gamma, beta, mean, var)


def init_basicblock_params(key, inplanes, planes, stride=1):
    ks = jax.random.split(key, 6)
    params = {
        "stride": stride,
        "conv1_w": _kaiming_conv(ks[0], planes, inplanes, 3),
        "bn1": _bn_init(ks[1], planes),
        "conv2_w": _kaiming_conv(ks[2], planes, planes, 3),
        "bn2": _bn_init(ks[3], planes),
    }
    if stride != 1 or inplanes != planes:
        params["down_w"] = _kaiming_conv(ks[4], planes, inplanes, 1)  # 1x1 downsample conv
        params["down_bn"] = _bn_init(ks[5], planes)
    return params


def prepare_conv_bn(w_oihw, bn):
    """One-time prep: OIHW -> (K,Cout), fold eval-BN scale, pad, cast bf16."""
    gamma, beta, mean, var = bn
    cout, cin, kh, kw = w_oihw.shape
    inv_std = 1.0 / jnp.sqrt(var + BN_EPS)
    scale = gamma * inv_std                      # (Cout,)
    bias = beta - mean * scale                   # (Cout,)
    wmat = jnp.transpose(w_oihw, (2, 3, 1, 0)).reshape(kh * kw * cin, cout)
    wmat = wmat * scale[None, :]                 # BN scale folded into weights
    K = kh * kw * cin
    Kp = _round_up(max(K, 128), 128)
    Coutp = _round_up(max(cout, 128), 128)       # lane-dense output
    wmat = jnp.pad(wmat, ((0, Kp - K), (0, Coutp - cout))).astype(jnp.bfloat16)
    bias = jnp.pad(bias, (0, Coutp - cout)).reshape(1, Coutp).astype(jnp.float32)
    return {"w": wmat, "b": bias, "k": kh, "pad": (kh - 1) // 2, "cout": cout}


def prepare_basicblock_params(raw):
    p = {"conv1": prepare_conv_bn(raw["conv1_w"], raw["bn1"]),
         "conv2": prepare_conv_bn(raw["conv2_w"], raw["bn2"])}
    if "down_w" in raw:
        p["downsample"] = prepare_conv_bn(raw["down_w"], raw["down_bn"])
    return p


# ------------------------------- forward --------------------------------

def basic_block_forward(x_nchw, params, stride):
    """Eval-mode BasicBlock.forward (NCHW in / NCHW out, like PyTorch)."""
    x = jnp.transpose(x_nchw, (0, 2, 3, 1)).astype(jnp.float32)  # -> NHWC
    identity = x
    out = conv_bn(x, params["conv1"], stride=stride, relu=True)
    if "downsample" in params:
        identity = conv_bn(x, params["downsample"], stride=stride, relu=False)
    # conv2 + bn2 + residual add + ReLU fused into one kernel epilogue
    out = conv_bn(out, params["conv2"], stride=1, relu=True, residual=identity)
    return jnp.transpose(out, (0, 3, 1, 2))                      # -> NCHW
    # TODO(synk): training-mode BatchNorm (batch statistics, running-stat
    # updates) is not part of the eval forward and is not implemented.


# ------------------------------ reference -------------------------------

def _reference_forward(x_nchw, raw):
    x = jnp.transpose(x_nchw, (0, 2, 3, 1)).astype(jnp.float32)

    def conv(a, w, stride, pad):
        return lax.conv_general_dilated(
            a, jnp.transpose(w, (2, 3, 1, 0)),
            window_strides=(stride, stride),
            padding=[(pad, pad), (pad, pad)],
            dimension_numbers=("NHWC", "HWIO", "NHWC"))

    def bnorm(a, bn):
        g, b, m, v = bn
        return (a - m) / jnp.sqrt(v + BN_EPS) * g + b

    s = raw["stride"]
    identity = x
    out = jnp.maximum(bnorm(conv(x, raw["conv1_w"], s, 1), raw["bn1"]), 0.0)
    out = bnorm(conv(out, raw["conv2_w"], 1, 1), raw["bn2"])
    if "down_w" in raw:
        identity = bnorm(conv(x, raw["down_w"], s, 0), raw["down_bn"])
    out = jnp.maximum(out + identity, 0.0)
    return jnp.transpose(out, (0, 3, 1, 2))


if __name__ == "__main__":
    key = jax.random.PRNGKey(0)
    kx, kp = jax.random.split(key)

    # BasicBlock(inplanes=64, planes=128, stride=2) -> exercises downsample.
    N, Cin, H, W = 2, 64, 16, 16
    planes, stride = 128, 2

    x = jax.random.normal(kx, (N, Cin, H, W), jnp.float32)
    raw = init_basicblock_params(kp, Cin, planes, stride)
    prepped = prepare_basicblock_params(raw)   # one-time weight prep (BN fold, bf16, pad)

    fwd = jax.jit(lambda xx: basic_block_forward(xx, prepped, stride))
    y = fwd(x)
    jax.block_until_ready(y)
    assert y.shape == (N, planes, H // stride, W // stride)
    assert y.dtype == jnp.float32

    y_ref = _reference_forward(x, raw)
    err = float(jnp.max(jnp.abs(y - y_ref)))
    assert err < 1e-1, f"max abs err vs f32 reference: {err}"

    print("KERNEL_OK")
</pallas_src>

<mosaic_0001>
module attributes {stable_mosaic.version = 11 : i64} {
  func.func @_mm_bias_kernel(%arg0: i32, %arg1: i32, %arg2: i32, %arg3: memref<128x128xbf16, #tpu.memory_space<vmem>>, %arg4: memref<128x128xbf16, #tpu.memory_space<vmem>>, %arg5: memref<1x128xf32, #tpu.memory_space<vmem>>, %arg6: memref<128x128xf32, #tpu.memory_space<vmem>>, %arg7: memref<128x128xf32, #tpu.memory_space<vmem>>) attributes {dimension_semantics = [#tpu.dimension_semantics<parallel>, #tpu.dimension_semantics<parallel>, #tpu.dimension_semantics<arbitrary>], iteration_bounds = array<i64: 1, 1, 5>, scalar_prefetch = 0 : i64, scratch_operands = 1 : i64, tpu.core_type = #tpu.core_type<tc>, window_params = [{transform_indices = @transform_0, window_bounds = array<i64: 128, 128>}, {transform_indices = @transform_1, window_bounds = array<i64: 128, 128>}, {transform_indices = @transform_2, window_bounds = array<i64: 1, 128>}, {transform_indices = @transform_3, window_bounds = array<i64: 128, 128>}]} {
    %c0_i32 = arith.constant 0 : i32
    %0 = arith.cmpi eq, %arg2, %c0_i32 : i32
    %1 = arith.extui %0 : i1 to i32
    %c0_i32_0 = arith.constant 0 : i32
    %2 = arith.cmpi ne, %1, %c0_i32_0 : i32
    scf.if %2 {
      %cst_9 = arith.constant 0.000000e+00 : f32
      %12 = vector.broadcast %cst_9 : f32 to vector<128x128xf32>
      %c0_10 = arith.constant 0 : index
      %c0_11 = arith.constant 0 : index
      %13 = vector.load %arg7[%c0_10, %c0_11] : memref<128x128xf32, #tpu.memory_space<vmem>>, vector<128x128xf32>
      tpu.vector_store %arg7[%c0_10, %c0_11], %12 {strides = array<i32>} : memref<128x128xf32, #tpu.memory_space<vmem>>, vector<128x128xf32>,
    } else {
    }
    %c0 = arith.constant 0 : index
    %c0_1 = arith.constant 0 : index
    %3 = vector.load %arg7[%c0, %c0_1] : memref<128x128xf32, #tpu.memory_space<vmem>>, vector<128x128xf32>
    %c0_2 = arith.constant 0 : index
    %c0_3 = arith.constant 0 : index
    %4 = vector.load %arg3[%c0_2, %c0_3] : memref<128x128xbf16, #tpu.memory_space<vmem>>, vector<128x128xbf16>
    %c0_4 = arith.constant 0 : index
    %c0_5 = arith.constant 0 : index
    %5 = vector.load %arg4[%c0_4, %c0_5] : memref<128x128xbf16, #tpu.memory_space<vmem>>, vector<128x128xbf16>
    %cst = arith.constant dense<0.000000e+00> : vector<128x128xf32>
    %6 = tpu.matmul %4, %5, %cst {dimension_numbers = #tpu.dot_dimension_numbers<[1], [0], [0], [1], [0, 0, 1, 1], [], []>} : vector<128x128xbf16>, vector<128x128xbf16>, vector<128x128xf32> -> vector<128x128xf32>
    %7 = arith.addf %3, %6 : vector<128x128xf32>
    %c0_6 = arith.constant 0 : index
    %c0_7 = arith.constant 0 : index
    %8 = vector.load %arg7[%c0_6, %c0_7] : memref<128x128xf32, #tpu.memory_space<vmem>>, vector<128x128xf32>
    tpu.vector_store %arg7[%c0_6, %c0_7], %7 {strides = array<i32>} : memref<128x128xf32, #tpu.memory_space<vmem>>, vector<128x128xf32>,
    %c4_i32 = arith.constant 4 : i32
    %9 = arith.cmpi eq, %arg2, %c4_i32 : i32
    %10 = arith.extui %9 : i1 to i32
    %c0_i32_8 = arith.constant 0 : i32
    %11 = arith.cmpi ne, %10, %c0_i32_8 : i32
    scf.if %11 {
      %c0_9 = arith.constant 0 : index
      %c0_10 = arith.constant 0 : index
      %12 = vector.load %arg7[%c0_9, %c0_10] : memref<128x128xf32, #tpu.memory_space<vmem>>, vector<128x128xf32>
      %c0_11 = arith.constant 0 : index
      %c0_12 = arith.constant 0 : index
      %13 = vector.load %arg5[%c0_11, %c0_12] : memref<1x128xf32, #tpu.memory_space<vmem>>, vector<1x128xf32>
      %14 = vector.broadcast %13 : vector<1x128xf32> to vector<128x128xf32>
      %15 = arith.addf %12, %14 : vector<128x128xf32>
      %cst_13 = arith.constant 0.000000e+00 : f32
      %16 = vector.broadcast %cst_13 : f32 to vector<128x128xf32>
      %17 = arith.maximumf %15, %16 : vector<128x128xf32>
      %c0_14 = arith.constant 0 : index
      %c0_15 = arith.constant 0 : index
      %18 = vector.load %arg6[%c0_14, %c0_15] : memref<128x128xf32, #tpu.memory_space<vmem>>, vector<128x128xf32>
      tpu.vector_store %arg6[%c0_14, %c0_15], %17 {strides = array<i32>} : memref<128x128xf32, #tpu.memory_space<vmem>>, vector<128x128xf32>,
    } else {
    }
    return
  }
  func.func @transform_0(%arg0: i32, %arg1: i32, %arg2: i32) -> (i32, i32) {
    %c0_i32 = arith.constant 0 : i32
    return %arg0, %arg2 : i32, i32
  }
  func.func @transform_1(%arg0: i32, %arg1: i32, %arg2: i32) -> (i32, i32) {
    %c0_i32 = arith.constant 0 : i32
    return %arg2, %arg1 : i32, i32
  }
  func.func @transform_2(%arg0: i32, %arg1: i32, %arg2: i32) -> (i32, i32) {
    %c0_i32 = arith.constant 0 : i32
    %c0_i32_0 = arith.constant 0 : i32
    return %c0_i32, %arg1 : i32, i32
  }
  func.func @transform_3(%arg0: i32, %arg1: i32, %arg2: i32) -> (i32, i32) {
    %c0_i32 = arith.constant 0 : i32
    return %arg0, %arg1 : i32, i32
  }
}

module attributes {stable_mosaic.version = 11 : i64} {
  func.func @_mm_bias_add_relu_kernel(%arg0: i32, %arg1: i32, %arg2: i32, %arg3: memref<128x128xbf16, #tpu.memory_space<vmem>>, %arg4: memref<128x128xbf16, #tpu.memory_space<vmem>>, %arg5: memref<1x128xf32, #tpu.memory_space<vmem>>, %arg6: memref<128x128xf32, #tpu.memory_space<vmem>>, %arg7: memref<128x128xf32, #tpu.memory_space<vmem>>, %arg8: memref<128x128xf32, #tpu.memory_space<vmem>>) attributes {dimension_semantics = [#tpu.dimension_semantics<parallel>, #tpu.dimension_semantics<parallel>, #tpu.dimension_semantics<arbitrary>], iteration_bounds = array<i64: 1, 1, 9>, scalar_prefetch = 0 : i64, scratch_operands = 1 : i64, tpu.core_type = #tpu.core_type<tc>, window_params = [{transform_indices = @transform_0, window_bounds = array<i64: 128, 128>}, {transform_indices = @transform_1, window_bounds = array<i64: 128, 128>}, {transform_indices = @transform_2, window_bounds = array<i64: 1, 128>}, {transform_indices = @transform_3, window_bounds = array<i64: 128, 128>}, {transform_indices = @transform_4, window_bounds = array<i64: 128, 128>}]} {
    %c0_i32 = arith.constant 0 : i32
    %0 = arith.cmpi eq, %arg2, %c0_i32 : i32
    %1 = arith.extui %0 : i1 to i32
    %c0_i32_0 = arith.constant 0 : i32
    %2 = arith.cmpi ne, %1, %c0_i32_0 : i32
    scf.if %2 {
      %cst_9 = arith.constant 0.000000e+00 : f32
      %12 = vector.broadcast %cst_9 : f32 to vector<128x128xf32>
      %c0_10 = arith.constant 0 : index
      %c0_11 = arith.constant 0 : index
      %13 = vector.load %arg8[%c0_10, %c0_11] : memref<128x128xf32, #tpu.memory_space<vmem>>, vector<128x128xf32>
      tpu.vector_store %arg8[%c0_10, %c0_11], %12 {strides = array<i32>} : memref<128x128xf32, #tpu.memory_space<vmem>>, vector<128x128xf32>,
    } else {
    }
    %c0 = arith.constant 0 : index
    %c0_1 = arith.constant 0 : index
    %3 = vector.load %arg8[%c0, %c0_1] : memref<128x128xf32, #tpu.memory_space<vmem>>, vector<128x128xf32>
    %c0_2 = arith.constant 0 : index
    %c0_3 = arith.constant 0 : index
    %4 = vector.load %arg3[%c0_2, %c0_3] : memref<128x128xbf16, #tpu.memory_space<vmem>>, vector<128x128xbf16>
    %c0_4 = arith.constant 0 : index
    %c0_5 = arith.constant 0 : index
    %5 = vector.load %arg4[%c0_4, %c0_5] : memref<128x128xbf16, #tpu.memory_space<vmem>>, vector<128x128xbf16>
    %cst = arith.constant dense<0.000000e+00> : vector<128x128xf32>
    %6 = tpu.matmul %4, %5, %cst {dimension_numbers = #tpu.dot_dimension_numbers<[1], [0], [0], [1], [0, 0, 1, 1], [], []>} : vector<128x128xbf16>, vector<128x128xbf16>, vector<128x128xf32> -> vector<128x128xf32>
    %7 = arith.addf %3, %6 : vector<128x128xf32>
    %c0_6 = arith.constant 0 : index
    %c0_7 = arith.constant 0 : index
    %8 = vector.load %arg8[%c0_6, %c0_7] : memref<128x128xf32, #tpu.memory_space<vmem>>, vector<128x128xf32>
    tpu.vector_store %arg8[%c0_6, %c0_7], %7 {strides = array<i32>} : memref<128x128xf32, #tpu.memory_space<vmem>>, vector<128x128xf32>,
    %c8_i32 = arith.constant 8 : i32
    %9 = arith.cmpi eq, %arg2, %c8_i32 : i32
    %10 = arith.extui %9 : i1 to i32
    %c0_i32_8 = arith.constant 0 : i32
    %11 = arith.cmpi ne, %10, %c0_i32_8 : i32
    scf.if %11 {
      %c0_9 = arith.constant 0 : index
      %c0_10 = arith.constant 0 : index
      %12 = vector.load %arg8[%c0_9, %c0_10] : memref<128x128xf32, #tpu.memory_space<vmem>>, vector<128x128xf32>
      %c0_11 = arith.constant 0 : index
      %c0_12 = arith.constant 0 : index
      %13 = vector.load %arg5[%c0_11, %c0_12] : memref<1x128xf32, #tpu.memory_space<vmem>>, vector<1x128xf32>
      %14 = vector.broadcast %13 : vector<1x128xf32> to vector<128x128xf32>
      %15 = arith.addf %12, %14 : vector<128x128xf32>
      %c0_13 = arith.constant 0 : index
      %c0_14 = arith.constant 0 : index
      %16 = vector.load %arg6[%c0_13, %c0_14] : memref<128x128xf32, #tpu.memory_space<vmem>>, vector<128x128xf32>
      %17 = arith.addf %15, %16 : vector<128x128xf32>
      %cst_15 = arith.constant 0.000000e+00 : f32
      %18 = vector.broadcast %cst_15 : f32 to vector<128x128xf32>
      %19 = arith.maximumf %17, %18 : vector<128x128xf32>
      %c0_16 = arith.constant 0 : index
      %c0_17 = arith.constant 0 : index
      %20 = vector.load %arg7[%c0_16, %c0_17] : memref<128x128xf32, #tpu.memory_space<vmem>>, vector<128x128xf32>
      tpu.vector_store %arg7[%c0_16, %c0_17], %19 {strides = array<i32>} : memref<128x128xf32, #tpu.memory_space<vmem>>, vector<128x128xf32>,
    } else {
    }
    return
  }
  func.func @transform_0(%arg0: i32, %arg1: i32, %arg2: i32) -> (i32, i32) {
    %c0_i32 = arith.constant 0 : i32
    return %arg0, %arg2 : i32, i32
  }
  func.func @transform_1(%arg0: i32, %arg1: i32, %arg2: i32) -> (i32, i32) {
    %c0_i32 = arith.constant 0 : i32
    return %arg2, %arg1 : i32, i32
  }
  func.func @transform_2(%arg0: i32, %arg1: i32, %arg2: i32) -> (i32, i32) {
    %c0_i32 = arith.constant 0 : i32
    %c0_i32_0 = arith.constant 0 : i32
    return %c0_i32, %arg1 : i32, i32
  }
  func.func @transform_3(%arg0: i32, %arg1: i32, %arg2: i32) -> (i32, i32) {
    %c0_i32 = arith.constant 0 : i32
    return %arg0, %arg1 : i32, i32
  }
  func.func @transform_4(%arg0: i32, %arg1: i32, %arg2: i32) -> (i32, i32) {
    %c0_i32 = arith.constant 0 : i32
    return %arg0, %arg1 : i32, i32
  }
}

module attributes {stable_mosaic.version = 11 : i64} {
  func.func @_mm_bias_kernel(%arg0: i32, %arg1: i32, %arg2: i32, %arg3: memref<128x128xbf16, #tpu.memory_space<vmem>>, %arg4: memref<128x128xbf16, #tpu.memory_space<vmem>>, %arg5: memref<1x128xf32, #tpu.memory_space<vmem>>, %arg6: memref<128x128xf32, #tpu.memory_space<vmem>>, %arg7: memref<128x128xf32, #tpu.memory_space<vmem>>) attributes {dimension_semantics = [#tpu.dimension_semantics<parallel>, #tpu.dimension_semantics<parallel>, #tpu.dimension_semantics<arbitrary>], iteration_bounds = array<i64: 1, 1, 1>, scalar_prefetch = 0 : i64, scratch_operands = 1 : i64, tpu.core_type = #tpu.core_type<tc>, window_params = [{transform_indices = @transform_0, window_bounds = array<i64: 128, 128>}, {transform_indices = @transform_1, window_bounds = array<i64: 128, 128>}, {transform_indices = @transform_2, window_bounds = array<i64: 1, 128>}, {transform_indices = @transform_3, window_bounds = array<i64: 128, 128>}]} {
    %c0_i32 = arith.constant 0 : i32
    %0 = arith.cmpi eq, %arg2, %c0_i32 : i32
    %1 = arith.extui %0 : i1 to i32
    %c0_i32_0 = arith.constant 0 : i32
    %2 = arith.cmpi ne, %1, %c0_i32_0 : i32
    scf.if %2 {
      %cst_10 = arith.constant 0.000000e+00 : f32
      %12 = vector.broadcast %cst_10 : f32 to vector<128x128xf32>
      %c0_11 = arith.constant 0 : index
      %c0_12 = arith.constant 0 : index
      %13 = vector.load %arg7[%c0_11, %c0_12] : memref<128x128xf32, #tpu.memory_space<vmem>>, vector<128x128xf32>
      tpu.vector_store %arg7[%c0_11, %c0_12], %12 {strides = array<i32>} : memref<128x128xf32, #tpu.memory_space<vmem>>, vector<128x128xf32>,
    } else {
    }
    %c0 = arith.constant 0 : index
    %c0_1 = arith.constant 0 : index
    %3 = vector.load %arg7[%c0, %c0_1] : memref<128x128xf32, #tpu.memory_space<vmem>>, vector<128x128xf32>
    %c0_2 = arith.constant 0 : index
    %c0_3 = arith.constant 0 : index
    %4 = vector.load %arg3[%c0_2, %c0_3] : memref<128x128xbf16, #tpu.memory_space<vmem>>, vector<128x128xbf16>
    %c0_4 = arith.constant 0 : index
    %c0_5 = arith.constant 0 : index
    %5 = vector.load %arg4[%c0_4, %c0_5] : memref<128x128xbf16, #tpu.memory_space<vmem>>, vector<128x128xbf16>
    %cst = arith.constant dense<0.000000e+00> : vector<128x128xf32>
    %6 = tpu.matmul %4, %5, %cst {dimension_numbers = #tpu.dot_dimension_numbers<[1], [0], [0], [1], [0, 0, 1, 1], [], []>} : vector<128x128xbf16>, vector<128x128xbf16>, vector<128x128xf32> -> vector<128x128xf32>
    %7 = arith.addf %3, %6 : vector<128x128xf32>
    %c0_6 = arith.constant 0 : index
    %c0_7 = arith.constant 0 : index
    %8 = vector.load %arg7[%c0_6, %c0_7] : memref<128x128xf32, #tpu.memory_space<vmem>>, vector<128x128xf32>
    tpu.vector_store %arg7[%c0_6, %c0_7], %7 {strides = array<i32>} : memref<128x128xf32, #tpu.memory_space<vmem>>, vector<128x128xf32>,
    %c0_i32_8 = arith.constant 0 : i32
    %9 = arith.cmpi eq, %arg2, %c0_i32_8 : i32
    %10 = arith.extui %9 : i1 to i32
    %c0_i32_9 = arith.constant 0 : i32
    %11 = arith.cmpi ne, %10, %c0_i32_9 : i32
    scf.if %11 {
      %c0_10 = arith.constant 0 : index
      %c0_11 = arith.constant 0 : index
      %12 = vector.load %arg7[%c0_10, %c0_11] : memref<128x128xf32, #tpu.memory_space<vmem>>, vector<128x128xf32>
      %c0_12 = arith.constant 0 : index
      %c0_13 = arith.constant 0 : index
      %13 = vector.load %arg5[%c0_12, %c0_13] : memref<1x128xf32, #tpu.memory_space<vmem>>, vector<1x128xf32>
      %14 = vector.broadcast %13 : vector<1x128xf32> to vector<128x128xf32>
      %15 = arith.addf %12, %14 : vector<128x128xf32>
      %c0_14 = arith.constant 0 : index
      %c0_15 = arith.constant 0 : index
      %16 = vector.load %arg6[%c0_14, %c0_15] : memref<128x128xf32, #tpu.memory_space<vmem>>, vector<128x128xf32>
      tpu.vector_store %arg6[%c0_14, %c0_15], %15 {strides = array<i32>} : memref<128x128xf32, #tpu.memory_space<vmem>>, vector<128x128xf32>,
    } else {
    }
    return
  }
  func.func @transform_0(%arg0: i32, %arg1: i32, %arg2: i32) -> (i32, i32) {
    %c0_i32 = arith.constant 0 : i32
    return %arg0, %arg2 : i32, i32
  }
  func.func @transform_1(%arg0: i32, %arg1: i32, %arg2: i32) -> (i32, i32) {
    %c0_i32 = arith.constant 0 : i32
    return %arg2, %arg1 : i32, i32
  }
  func.func @transform_2(%arg0: i32, %arg1: i32, %arg2: i32) -> (i32, i32) {
    %c0_i32 = arith.constant 0 : i32
    %c0_i32_0 = arith.constant 0 : i32
    return %c0_i32, %arg1 : i32, i32
  }
  func.func @transform_3(%arg0: i32, %arg1: i32, %arg2: i32) -> (i32, i32) {
    %c0_i32 = arith.constant 0 : i32
    return %arg0, %arg1 : i32, i32
  }
}

</mosaic_0001>

<bundles_post_ra>
// kernel: _lambda_.4
= control target key start
LH: loop header
LB: loop body
LE: loop exit
PB: predicated region body
PF: predicated region fallthrough
CT: control target
= control target key end

     0   :  { %s586_s1 = inlined_call_operand.vmem [shape: bf16[128,128], index: 1, kind: input, shape index: {}]   ;;  %s587_s0 = inlined_call_operand.vmem [shape: bf16[128,128], index: 0, kind: input, shape index: {}]   ;;  %s588_s2 = inlined_call_operand.vmem [shape: f32[1,128], index: 2, kind: input, shape index: {}]   ;;  %s589_s3 = inlined_call_operand.vmem [shape: f32[128,128], index: 3, kind: output, shape index: {}]  }
   0x1   :  { %v451_v0 = vld [vmem:[%s586_s1 + $0x38] sm:$0xff]   ;;  %v452_v1 = vld [vmem:[%s586_s1 + $0x30] sm:$0xff]   ;;  %v453_v2 = vld [vmem:[%s586_s1 + $0x28] sm:$0xff]  }
   0x2   :  { %403 = vmatprep.subr.bf16.mxu0 %v451_v0  ;;  %435 = vmatprep.subr.bf16.mxu1 %v451_v0  ;;  %v454_v3 = vld [vmem:[%s586_s1 + $0x20] sm:$0xff]   ;;  %v455_v6 = vld [vmem:[%s586_s1 + $0x18] sm:$0xff]   ;;  %v456_v7 = vld [vmem:[%s586_s1 + $0x10] sm:$0xff]  }
   0x3   :  { %404 = vmatpush3.bf16.msra.mxu0 %v451_v0  ;;  %443 = vmatpush3.bf16.msra.mxu1 %v451_v0  ;;  %v459_v4 = vld [vmem:[%s587_s0] sm:$0xff]   ;;  %v457_v8 = vld [vmem:[%s586_s1 + $0x8] sm:$0xff]   ;;  %v463_v12 = vld [vmem:[%s587_s0 + $0x10] sm:$0xff]  }
   0x4   :  { %405 = vmatprep.subr.bf16.mxu0 %v452_v1  ;;  %436 = vmatprep.subr.bf16.mxu1 %v452_v1  ;;  %v460_v5 = vld [vmem:[%s587_s0 + $0x20] sm:$0xff]   ;;  %v461_v10 = vld [vmem:[%s587_s0 + $0x8] sm:$0xff]   ;;  %v464_v13 = vld [vmem:[%s587_s0 + $0x30] sm:$0xff]  }
   0x5   :  { %419 = vmatprep.mubr.bf16.mxu0 %v459_v4  ;;  %427 = vmatprep.mubr.bf16.mxu1 %v460_v5  ;;  %v458_v9 = vld [vmem:[%s586_s1] sm:$0xff]   ;;  %v462_v11 = vld [vmem:[%s587_s0 + $0x28] sm:$0xff]   ;;  %v465_v14 = vld [vmem:[%s587_s0 + $0x18] sm:$0xff]  }
   0x6   :  { %v466_v15 = vld [vmem:[%s587_s0 + $0x38] sm:$0xff]   ;;  %v386_v16 = vld [vmem:[%s588_s2] ss:$0 sm:$0xff] }
   0x7   :  { %406 = vmatpush3.bf16.msra.mxu0 %v452_v1  ;;  %444 = vmatpush3.bf16.msra.mxu1 %v452_v1 }
   0x8   :  { %407 = vmatprep.subr.bf16.mxu0 %v453_v2  ;;  %437 = vmatprep.subr.bf16.mxu1 %v453_v2 }
   0xb   :  { %408 = vmatpush3.bf16.msra.mxu0 %v453_v2  ;;  %445 = vmatpush3.bf16.msra.mxu1 %v453_v2 }
   0xc   :  { %409 = vmatprep.subr.bf16.mxu0 %v454_v3  ;;  %438 = vmatprep.subr.bf16.mxu1 %v454_v3 }
   0xf   :  { %410 = vmatpush3.bf16.msra.mxu0 %v454_v3  ;;  %446 = vmatpush3.bf16.msra.mxu1 %v454_v3 }
  0x10   :  { %411 = vmatprep.subr.bf16.mxu0 %v455_v6  ;;  %439 = vmatprep.subr.bf16.mxu1 %v455_v6 }
  0x13   :  { %412 = vmatpush3.bf16.msra.mxu0 %v455_v6  ;;  %447 = vmatpush3.bf16.msra.mxu1 %v455_v6 }
  0x14   :  { %413 = vmatprep.subr.bf16.mxu0 %v456_v7  ;;  %440 = vmatprep.subr.bf16.mxu1 %v456_v7 }
  0x17   :  { %414 = vmatpush3.bf16.msra.mxu0 %v456_v7  ;;  %448 = vmatpush3.bf16.msra.mxu1 %v456_v7 }
  0x18   :  { %415 = vmatprep.subr.bf16.mxu0 %v457_v8  ;;  %441 = vmatprep.subr.bf16.mxu1 %v457_v8 }
  0x1b   :  { %416 = vmatpush3.bf16.msra.mxu0 %v457_v8  ;;  %449 = vmatpush3.bf16.msra.mxu1 %v457_v8 }
  0x1c   :  { %417 = vmatprep.subr.bf16.mxu0 %v458_v9  ;;  %442 = vmatprep.subr.bf16.mxu1 %v458_v9 }
  0x1f   :  { %418 = vmatpush3.bf16.msra.mxu0 %v458_v9  ;;  %450 = vmatpush3.bf16.msra.mxu1 %v458_v9 }
  0x22   :  { %420 = vmatmul.mubr.bf16.vlgmr.msra.gmra.mxu0 %v461_v10  ;;  %428 = vmatmul.mubr.bf16.vlgmr.msra.gmra.mxu1 %v462_v11 }
  0x23   :  { %423 = vmatprep.mubr.bf16.mxu0 %v463_v12  ;;  %431 = vmatprep.mubr.bf16.mxu1 %v464_v13 }
  0x2a   :  { %424 = vmatmul.mubr.bf16.gmra.mxu0 %v465_v14  ;;  %432 = vmatmul.mubr.bf16.gmra.mxu1 %v466_v15 }
  0xe2   :  { %v421_v17 = vpop.f32.mrf.mxu0  ;;  %v429_v18 = vpop.f32.mrf.mxu1 }
  0xe3   :  { %v336_v19 = vadd.f32 %v421_v17, %v386_v16  ;;  %v344_v20 = vadd.f32 %v429_v18, %v386_v16 }
  0xe4   :  { %v213_v21 = vpop.f32.mrf.mxu0  ;;  %v245_v22 = vpop.f32.mrf.mxu1 }
  0xe5   :  { %352 = vst [vmem:[%s589_s3 + $0x10] sm:$0xff] %v336_v19  ;;  %360 = vst [vmem:[%s589_s3 + $0x50] sm:$0xff] %v344_v20  ;;  %v334_v23 = vadd.f32 %v386_v16, %v213_v21  ;;  %v342_v24 = vadd.f32 %v386_v16, %v245_v22 }
  0xe6   :  { %v422_v25 = vpop.f32.mrf.mxu0  ;;  %v430_v26 = vpop.f32.mrf.mxu1 }
  0xe7   :  { %350 = vst [vmem:[%s589_s3] sm:$0xff] %v334_v23  ;;  %358 = vst [vmem:[%s589_s3 + $0x40] sm:$0xff] %v342_v24  ;;  %v337_v27 = vadd.f32 %v422_v25, %v386_v16  ;;  %v345_v28 = vadd.f32 %v430_v26, %v386_v16 }
  0xe8   :  { %v216_v29 = vpop.f32.mrf.mxu0  ;;  %v248_v30 = vpop.f32.mrf.mxu1 }
  0xe9   :  { %353 = vst [vmem:[%s589_s3 + $0x18] sm:$0xff] %v337_v27  ;;  %361 = vst [vmem:[%s589_s3 + $0x58] sm:$0xff] %v345_v28  ;;  %v335_v31 = vadd.f32 %v386_v16, %v216_v29  ;;  %v343_v32 = vadd.f32 %v386_v16, %v248_v30 }
  0xea   :  { %v425_v33 = vpop.f32.mrf.mxu0  ;;  %v433_v34 = vpop.f32.mrf.mxu1 }
  0xeb   :  { %351 = vst [vmem:[%s589_s3 + $0x8] sm:$0xff] %v335_v31  ;;  %359 = vst [vmem:[%s589_s3 + $0x48] sm:$0xff] %v343_v32  ;;  %v340_v35 = vadd.f32 %v425_v33, %v386_v16  ;;  %v348_v36 = vadd.f32 %v433_v34, %v386_v16 }
  0xec   :  { %v229_v37 = vpop.f32.mrf.mxu0  ;;  %v261_v38 = vpop.f32.mrf.mxu1 }
  0xed   :  { %356 = vst [vmem:[%s589_s3 + $0x30] sm:$0xff] %v340_v35  ;;  %364 = vst [vmem:[%s589_s3 + $0x70] sm:$0xff] %v348_v36  ;;  %v338_v39 = vadd.f32 %v386_v16, %v229_v37  ;;  %v346_v40 = vadd.f32 %v386_v16, %v261_v38 }
  0xee   :  { %v426_v41 = vpop.f32.mrf.mxu0  ;;  %v434_v42 = vpop.f32.mrf.mxu1 }
  0xef   :  { %354 = vst [vmem:[%s589_s3 + $0x20] sm:$0xff] %v338_v39  ;;  %362 = vst [vmem:[%s589_s3 + $0x60] sm:$0xff] %v346_v40  ;;  %v341_v43 = vadd.f32 %v426_v41, %v386_v16  ;;  %v349_v44 = vadd.f32 %v434_v42, %v386_v16 }
  0xf0   :  { %v232_v45 = vpop.f32.mrf.mxu0  ;;  %v264_v46 = vpop.f32.mrf.mxu1 }
  0xf1   :  { %357 = vst [vmem:[%s589_s3 + $0x38] sm:$0xff] %v341_v43  ;;  %365 = vst [vmem:[%s589_s3 + $0x78] sm:$0xff] %v349_v44  ;;  %v339_v47 = vadd.f32 %v386_v16, %v232_v45  ;;  %v347_v48 = vadd.f32 %v386_v16, %v264_v46 }
  0xf3   :  { %355 = vst [vmem:[%s589_s3 + $0x28] sm:$0xff] %v339_v47  ;;  %363 = vst [vmem:[%s589_s3 + $0x68] sm:$0xff] %v347_v48 }

// kernel: _lambda_.5
= control target key start
LH: loop header
LB: loop body
LE: loop exit
PB: predicated region body
PF: predicated region fallthrough
CT: control target
= control target key end

     0   :  { %9 = vsyncpa [#allocation5], 0  ;;  %s1183_s15 = smov 0   ;;  %s1185_s16 = smov 0   ;;  %s1375_s0 = inlined_call_operand.vmem [shape: bf16[128,1152], index: 0, kind: input, shape index: {}]   ;;  %s1376_s1 = inlined_call_operand.vmem [shape: bf16[1152,128], index: 1, kind: input, shape index: {}]   ;;  %s1377_s2 = inlined_call_operand.vmem [shape: f32[1,128], index: 2, kind: input, shape index: {}]   ;;  %s1378_s3 = inlined_call_operand.vmem [shape: f32[128,128], index: 3, kind: input, shape index: {}]   ;;  %s1379_s4 = inlined_call_operand.hbm [shape: f32[128,128], index: 4, kind: output, shape index: {}]  }
   0x1   :  { %s1187_s17 = smov 0   ;;  %s1189_s18 = smov 0  }
   0x2   :  { %s1191_s19 = smov 0  }
   0x3 LB: > { %s922_s20 = sadd.s32 4294967295, %s1152_s19   ;;  %s27_s21 = sadd.s32 1, %s1148_s18  ;;  %s1152_s19 = sphi %s1191_s19, %s15_s19   ;;  %s1148_s18 = sphi %s1189_s18, %s1384_s18   ;;  %s1144_s17 = sphi %s1187_s17, %s1383_s17   ;;  %s1140_s16 = sphi %s1185_s16, %s1382_s16   ;;  %s1136_s15 = sphi %s1183_s15, %s1381_s15  }
   0x4   : > { %p28_p0 = scmp.ge.s32.totalorder %s27_s21, 9  ;;  %p50_p1 = scmp.ne.s32.totalorder %s1140_s16, %s1136_s15 }
   0x5   : > { %p51_p2 = scmp.eq.s32.totalorder %s1152_s19, 0  ;;  %s43_s23 = sadd.s32 1, %s1140_s16 }
   0x6   : > { %s1386_s21 = smov (%p28_p0, %s27_s21), 0  ;;  %p926_p5 = scmp.ge.s32.totalorder %s1152_s19, 9 }
   0x7   : > { %p52_p3 = por %p51_p2, %p50_p1  ;;  %s39_s22 = ssub.s32 %s1148_s18, %s1386_s21 }
   0x8   : > { %p41_p4 = scmp.eq.s32.totalorder %s39_s22, 0  ;;  %204 = sbr.rel (%p926_p5) target bundleno = 27 (0x1b), region = 24 }
   0xa   : > { %s1219_s24 = scalar_select %p41_p4, %s1140_s16, %s43_s23  }
   0xd   : > { %207 = sbr.rel (!%p52_p3) target bundleno = 27 (0x1b), region = 28  ;;  %s209_s25 = sand.u32 (%p52_p3), 1, %s1140_s16  }
   0xe   : > { %s928_s26 = sshll.u32 (%p52_p3), %s1148_s18, 2  ;;  %s927_s27 = sshll.u32 (%p52_p3), %s209_s25, 6 }
   0xf   : > { %s1227_s30 = scalar_lea.vmem (%p52_p3), %s1375_s0, %s928_s26  ;;  %s211_s5 = scalar_lea.vmem (%p52_p3), [#allocation3], %s927_s27 }
  0x10   : > { %v233_v0 = vld [vmem:[%s1227_s30] sm:$0xf] (%p52_p3)  ;;  %v235_v1 = vld [vmem:[%s1227_s30 + $0x24] sm:$0xf] (%p52_p3)  ;;  %v237_v2 = vld [vmem:[%s1227_s30 + $0x48] sm:$0xf] (%p52_p3) }
  0x11   : > { %234 = vst [vmem:[%s211_s5] sm:$0xf] (%p52_p3), %v233_v0  ;;  %236 = vst [vmem:[%s211_s5 + $0x4] sm:$0xf] (%p52_p3), %v235_v1  ;;  %v239_v3 = vld [vmem:[%s1227_s30 + $0x6c] sm:$0xf] (%p52_p3) }
  0x12   : > { %v241_v4 = vld [vmem:[%s1227_s30 + $0x90] sm:$0xf]  ;;  %238 = vst [vmem:[%s211_s5 + $0x8] sm:$0xf] %v237_v2  ;;  %240 = vst [vmem:[%s211_s5 + $0xc] sm:$0xf] %v239_v3 }
  0x13   : > { %242 = vst [vmem:[%s211_s5 + $0x10] sm:$0xf] %v241_v4  ;;  %v243_v5 = vld [vmem:[%s1227_s30 + $0xb4] sm:$0xf]  ;;  %v245_v6 = vld [vmem:[%s1227_s30 + $0xd8] sm:$0xf] }
  0x14   : > { %v247_v7 = vld [vmem:[%s1227_s30 + $0xfc] sm:$0xf]  ;;  %244 = vst [vmem:[%s211_s5 + $0x14] sm:$0xf] %v243_v5  ;;  %246 = vst [vmem:[%s211_s5 + $0x18] sm:$0xf] %v245_v6 }
  0x15   : > { %248 = vst [vmem:[%s211_s5 + $0x1c] sm:$0xf] %v247_v7  ;;  %v249_v8 = vld [vmem:[%s1227_s30 + $0x120] sm:$0xf]  ;;  %v251_v9 = vld [vmem:[%s1227_s30 + $0x144] sm:$0xf] }
  0x16   : > { %v253_v10 = vld [vmem:[%s1227_s30 + $0x168] sm:$0xf]  ;;  %250 = vst [vmem:[%s211_s5 + $0x20] sm:$0xf] %v249_v8  ;;  %252 = vst [vmem:[%s211_s5 + $0x24] sm:$0xf] %v251_v9 }
  0x17   : > { %254 = vst [vmem:[%s211_s5 + $0x28] sm:$0xf] %v253_v10  ;;  %v255_v11 = vld [vmem:[%s1227_s30 + $0x18c] sm:$0xf]  ;;  %v257_v12 = vld [vmem:[%s1227_s30 + $0x1b0] sm:$0xf] }
  0x18   : > { %v259_v13 = vld [vmem:[%s1227_s30 + $0x1d4] sm:$0xf]  ;;  %256 = vst [vmem:[%s211_s5 + $0x2c] sm:$0xf] %v255_v11  ;;  %258 = vst [vmem:[%s211_s5 + $0x30] sm:$0xf] %v257_v12 }
  0x19   : > { %260 = vst [vmem:[%s211_s5 + $0x34] sm:$0xf] %v259_v13  ;;  %v261_v14 = vld [vmem:[%s1227_s30 + $0x1f8] sm:$0xf]  ;;  %v263_v15 = vld [vmem:[%s1227_s30 + $0x21c] sm:$0xf] }
  0x1a   : > { %262 = vst [vmem:[%s211_s5 + $0x38] sm:$0xf] %v261_v14  ;;  %264 = vst [vmem:[%s211_s5 + $0x3c] sm:$0xf] %v263_v15 }
  0x1b PF: > { %p929_p6 = scmp.ge.s32.totalorder %s1152_s19, 1  ;;  %p331_p7 = scmp.lt.s32.totalorder %s1152_s19, 10 }
  0x1d   : > { %p332_p8 = pnand %p929_p6, %p331_p7 }
  0x1e   : > { %s338_s6 = sand.u32 (!%p332_p8), 1, %s1136_s15   ;;  %s931_s7 = sshll.u32 (!%p332_p8), %s1144_s17, 4 }
  0x1f   : > { %335 = sbr.rel (%p332_p8) target bundleno = 329 (0x149), region = 73  ;;  %s930_s8 = sshll.u32 (!%p332_p8), %s338_s6, 6 }
  0x20   : > { %p379_p9 = scmp.lt.s32.totalorder (!%p332_p8), %s931_s7, 143  ;;  %s1254_s13 = scalar_lea.vmem (!%p332_p8), [#allocation3], %s930_s8 }
  0x21   : > { %p933_p10 = scmp.ne.s32.totalorder (!%p332_p8), %s1144_s17, 0 }
  0x24   : > { %s1388_s7 = smov (!%p379_p9, %s931_s7), 143  ;;  %404 = sbr.rel (%p933_p10) target bundleno = 50 (0x32), region = 81 }
  0x25   : > { %s932_s9 = sshll.u32 %s1388_s7, 2 }
  0x26   : > { %s1252_s12 = scalar_lea.vmem %s1376_s1, %s932_s9 }
  0x29   : > { %v1154_v16 = vmov 0.0  }
  0x2a   : > { %405 = vst [vmem:[#allocation2 + $0x30] sm:$0xff] %v1154_v16  ;;  %406 = vst [vmem:[#allocation2] sm:$0xff] %v1154_v16 }
  0x2b   : > { %407 = vst [vmem:[#allocation2 + $0x58] sm:$0xff] %v1154_v16  ;;  %408 = vst [vmem:[#allocation2 + $0x18] sm:$0xff] %v1154_v16 }
  0x2c   : > { %409 = vst [vmem:[#allocation2 + $0x50] sm:$0xff] %v1154_v16  ;;  %410 = vst [vmem:[#allocation2 + $0x68] sm:$0xff] %v1154_v16 }
  0x2d   : > { %411 = vst [vmem:[#allocation2 + $0x8] sm:$0xff] %v1154_v16  ;;  %412 = vst [vmem:[#allocation2 + $0x48] sm:$0xff] %v1154_v16 }
  0x2e   : > { %413 = vst [vmem:[#allocation2 + $0x40] sm:$0xff] %v1154_v16  ;;  %414 = vst [vmem:[#allocation2 + $0x20] sm:$0xff] %v1154_v16 }
  0x2f   : > { %415 = vst [vmem:[#allocation2 + $0x10] sm:$0xff] %v1154_v16  ;;  %416 = vst [vmem:[#allocation2 + $0x38] sm:$0xff] %v1154_v16 }
  0x30   : > { %417 = vst [vmem:[#allocation2 + $0x60] sm:$0xff] %v1154_v16  ;;  %418 = vst [vmem:[#allocation2 + $0x70] sm:$0xff] %v1154_v16 }
  0x31   : > { %419 = vst [vmem:[#allocation2 + $0x78] sm:$0xff] %v1154_v16  ;;  %420 = vst [vmem:[#allocation2 + $0x28] sm:$0xff] %v1154_v16 }
  0x32 PF: > { %v1070_v17 = vld [vmem:[%s1252_s12 + $0x38] sm:$0xff]   ;;  %v1071_v18 = vld [vmem:[%s1252_s12 + $0x30] sm:$0xff]   ;;  %v1072_v19 = vld [vmem:[%s1252_s12 + $0x28] sm:$0xff]   ;;  %p950_p11 = scmp.ne.s32.totalorder %s1144_s17, 8 }
  0x33   : > { %972 = vmatprep.subr.bf16.mxu0 %v1070_v17  ;;  %1004 = vmatprep.subr.bf16.mxu1 %v1070_v17  ;;  %v1073_v20 = vld [vmem:[%s1252_s12 + $0x20] sm:$0xff]   ;;  %v1074_v23 = vld [vmem:[%s1252_s12 + $0x18] sm:$0xff]   ;;  %v1075_v24 = vld [vmem:[%s1252_s12 + $0x10] sm:$0xff]  }
  0x34   : > { %973 = vmatpush3.bf16.msra.mxu0 %v1070_v17  ;;  %1012 = vmatpush3.bf16.msra.mxu1 %v1070_v17  ;;  %v1078_v21 = vld [vmem:[%s1254_s13] sm:$0xff]   ;;  %v1076_v25 = vld [vmem:[%s1252_s12 + $0x8] sm:$0xff]   ;;  %v1082_v29 = vld [vmem:[%s1254_s13 + $0x10] sm:$0xff]  }
  0x35   : > { %974 = vmatprep.subr.bf16.mxu0 %v1071_v18  ;;  %1005 = vmatprep.subr.bf16.mxu1 %v1071_v18  ;;  %v1079_v22 = vld [vmem:[%s1254_s13 + $0x20] sm:$0xff]   ;;  %v1080_v27 = vld [vmem:[%s1254_s13 + $0x8] sm:$0xff]   ;;  %v1083_v30 = vld [vmem:[%s1254_s13 + $0x30] sm:$0xff]  }
  0x36   : > { %988 = vmatprep.mubr.bf16.mxu0 %v1078_v21  ;;  %996 = vmatprep.mubr.bf16.mxu1 %v1079_v22  ;;  %v1077_v26 = vld [vmem:[%s1252_s12] sm:$0xff]   ;;  %v1081_v28 = vld [vmem:[%s1254_s13 + $0x28] sm:$0xff]   ;;  %v1084_v31 = vld [vmem:[%s1254_s13 + $0x18] sm:$0xff]  }
  0x37   : > { %v1085_v32 = vld [vmem:[%s1254_s13 + $0x38] sm:$0xff]   ;;  %v431_v34 = vld [vmem:[#allocation2 + $0x10] sm:$0xff]  ;;  %v429_v38 = vld [vmem:[#allocation2 + $0x40] sm:$0xff] }
  0x38   : > { %975 = vmatpush3.bf16.msra.mxu0 %v1071_v18  ;;  %1013 = vmatpush3.bf16.msra.mxu1 %v1071_v18  ;;  %v423_v33 = vld [vmem:[#allocation2 + $0x58] sm:$0xff]  ;;  %v421_v37 = vld [vmem:[#allocation2 + $0x30] sm:$0xff]  ;;  %v422_v49 = vld [vmem:[#allocation2] sm:$0xff] }
  0x39   : > { %976 = vmatprep.subr.bf16.mxu0 %v1072_v19  ;;  %1006 = vmatprep.subr.bf16.mxu1 %v1072_v19  ;;  %v424_v43 = vld [vmem:[#allocation2 + $0x18] sm:$0xff]  ;;  %v430_v50 = vld [vmem:[#allocation2 + $0x20] sm:$0xff]  ;;  %v427_v55 = vld [vmem:[#allocation2 + $0x8] sm:$0xff] }
  0x3a   : > { %v432_v44 = vld [vmem:[#allocation2 + $0x38] sm:$0xff]  ;;  %v425_v61 = vld [vmem:[#allocation2 + $0x50] sm:$0xff]  ;;  %v433_v62 = vld [vmem:[#allocation2 + $0x60] sm:$0xff] }
  0x3b   : > { %v435_v56 = vld [vmem:[#allocation2 + $0x78] sm:$0xff]  ;;  %v428_v3 = vld [vmem:[#allocation2 + $0x48] sm:$0xff]  ;;  %v434_v10 = vld [vmem:[#allocation2 + $0x70] sm:$0xff] }
  0x3c   : > { %977 = vmatpush3.bf16.msra.mxu0 %v1072_v19  ;;  %1014 = vmatpush3.bf16.msra.mxu1 %v1072_v19  ;;  %v436_v4 = vld [vmem:[#allocation2 + $0x28] sm:$0xff] }
  0x3d   : > { %978 = vmatprep.subr.bf16.mxu0 %v1073_v20  ;;  %1007 = vmatprep.subr.bf16.mxu1 %v1073_v20  ;;  %v426_v9 = vld [vmem:[#allocation2 + $0x68] sm:$0xff] }
  0x40   : > { %979 = vmatpush3.bf16.msra.mxu0 %v1073_v20  ;;  %1015 = vmatpush3.bf16.msra.mxu1 %v1073_v20 }
  0x41   : > { %980 = vmatprep.subr.bf16.mxu0 %v1074_v23  ;;  %1008 = vmatprep.subr.bf16.mxu1 %v1074_v23 }
  0x44   : > { %981 = vmatpush3.bf16.msra.mxu0 %v1074_v23  ;;  %1016 = vmatpush3.bf16.msra.mxu1 %v1074_v23 }
  0x45   : > { %982 = vmatprep.subr.bf16.mxu0 %v1075_v24  ;;  %1009 = vmatprep.subr.bf16.mxu1 %v1075_v24 }
  0x48   : > { %983 = vmatpush3.bf16.msra.mxu0 %v1075_v24  ;;  %1017 = vmatpush3.bf16.msra.mxu1 %v1075_v24 }
  0x49   : > { %984 = vmatprep.subr.bf16.mxu0 %v1076_v25  ;;  %1010 = vmatprep.subr.bf16.mxu1 %v1076_v25 }
  0x4c   : > { %985 = vmatpush3.bf16.msra.mxu0 %v1076_v25  ;;  %1018 = vmatpush3.bf16.msra.mxu1 %v1076_v25 }
  0x4d   : > { %986 = vmatprep.subr.bf16.mxu0 %v1077_v26  ;;  %1011 = vmatprep.subr.bf16.mxu1 %v1077_v26 }
  0x50   : > { %987 = vmatpush3.bf16.msra.mxu0 %v1077_v26  ;;  %1019 = vmatpush3.bf16.msra.mxu1 %v1077_v26 }
  0x53   : > { %989 = vmatmul.mubr.bf16.vlgmr.msra.gmra.mxu0 %v1080_v27  ;;  %997 = vmatmul.mubr.bf16.vlgmr.msra.gmra.mxu1 %v1081_v28 }
  0x54   : > { %992 = vmatprep.mubr.bf16.mxu0 %v1082_v29  ;;  %1000 = vmatprep.mubr.bf16.mxu1 %v1083_v30 }
  0x5b   : > { %993 = vmatmul.mubr.bf16.gmra.mxu0 %v1084_v31  ;;  %1001 = vmatmul.mubr.bf16.gmra.mxu1 %v1085_v32 }
 0x113   : > { %v990_v35 = vpop.f32.mrf.mxu0  ;;  %v998_v36 = vpop.f32.mrf.mxu1 }
 0x114   : > { %v664_v39 = vadd.f32 %v990_v35, %v423_v33  ;;  %v672_v40 = vadd.f32 %v998_v36, %v431_v34 }
 0x115   : > { %v599_v41 = vpop.f32.mrf.mxu0  ;;  %v631_v42 = vpop.f32.mrf.mxu1 }
 0x116   : > { %680 = vst [vmem:[#allocation2 + $0x58] sm:$0xff] %v664_v39  ;;  %688 = vst [vmem:[#allocation2 + $0x10] sm:$0xff] %v672_v40  ;;  %v662_v45 = vadd.f32 %v599_v41, %v421_v37  ;;  %v670_v46 = vadd.f32 %v631_v42, %v429_v38 }
 0x117   : > { %v991_v47 = vpop.f32.mrf.mxu0  ;;  %v999_v48 = vpop.f32.mrf.mxu1 }
 0x118   : > { %678 = vst [vmem:[#allocation2 + $0x30] sm:$0xff] %v662_v45  ;;  %686 = vst [vmem:[#allocation2 + $0x40] sm:$0xff] %v670_v46  ;;  %v665_v51 = vadd.f32 %v991_v47, %v424_v43  ;;  %v673_v52 = vadd.f32 %v999_v48, %v432_v44 }
 0x119   : > { %v602_v53 = vpop.f32.mrf.mxu0  ;;  %v634_v54 = vpop.f32.mrf.mxu1 }
 0x11a   : > { %681 = vst [vmem:[#allocation2 + $0x18] sm:$0xff] %v665_v51  ;;  %689 = vst [vmem:[#allocation2 + $0x38] sm:$0xff] %v673_v52  ;;  %v663_v57 = vadd.f32 %v602_v53, %v422_v49  ;;  %v671_v58 = vadd.f32 %v634_v54, %v430_v50 }
 0x11b   : > { %v994_v59 = vpop.f32.mrf.mxu0  ;;  %v1002_v60 = vpop.f32.mrf.mxu1 }
 0x11c   : > { %679 = vst [vmem:[#allocation2] sm:$0xff] %v663_v57  ;;  %687 = vst [vmem:[#allocation2 + $0x20] sm:$0xff] %v671_v58  ;;  %v668_v63 = vadd.f32 %v994_v59, %v427_v55  ;;  %v676_v0 = vadd.f32 %v1002_v60, %v435_v56 }
 0x11d   : > { %v615_v1 = vpop.f32.mrf.mxu0  ;;  %v647_v2 = vpop.f32.mrf.mxu1 }
 0x11e   : > { %684 = vst [vmem:[#allocation2 + $0x8] sm:$0xff] %v668_v63  ;;  %692 = vst [vmem:[#allocation2 + $0x78] sm:$0xff] %v676_v0  ;;  %v666_v5 = vadd.f32 %v615_v1, %v425_v61  ;;  %v674_v6 = vadd.f32 %v647_v2, %v433_v62 }
 0x11f   : > { %v995_v7 = vpop.f32.mrf.mxu0  ;;  %v1003_v8 = vpop.f32.mrf.mxu1 }
 0x120   : > { %682 = vst [vmem:[#allocation2 + $0x50] sm:$0xff] %v666_v5  ;;  %690 = vst [vmem:[#allocation2 + $0x60] sm:$0xff] %v674_v6  ;;  %v669_v11 = vadd.f32 %v995_v7, %v428_v3  ;;  %v677_v12 = vadd.f32 %v1003_v8, %v436_v4  ;;  %697 = sbr.rel (%p950_p11) target bundleno = 313 (0x139), region = 85 }
 0x121   : > { %v618_v13 = vpop.f32.mrf.mxu0  ;;  %v650_v14 = vpop.f32.mrf.mxu1 }
 0x122   : > { %685 = vst [vmem:[#allocation2 + $0x48] sm:$0xff] %v669_v11  ;;  %693 = vst [vmem:[#allocation2 + $0x28] sm:$0xff] %v677_v12  ;;  %v667_v15 = vadd.f32 %v618_v13, %v426_v9  ;;  %v675_v16 = vadd.f32 %v650_v14, %v434_v10 }
 0x124   : > { %683 = vst [vmem:[#allocation2 + $0x68] sm:$0xff] %v667_v15  ;;  %691 = vst [vmem:[#allocation2 + $0x70] sm:$0xff] %v675_v16 }
 0x125   : > { %v698_v17 = vld [vmem:[#allocation2 + $0x30] sm:$0xff]  ;;  %v1277_v18 = vld [vmem:[%s1377_s2] ss:$0 sm:$0xff]  ;;  %v738_v22 = vld [vmem:[%s1378_s3 + $0x8] sm:$0xff] }
 0x126   : > { %v737_v19 = vld [vmem:[%s1378_s3] sm:$0xff]  ;;  %v721_v20 = vadd.f32 %v1277_v18, %v698_v17  ;;  %v700_v23 = vld [vmem:[#allocation2 + $0x58] sm:$0xff]  ;;  %v739_v26 = vld [vmem:[%s1378_s3 + $0x10] sm:$0xff] }
 0x127   : > { %v699_v21 = vld [vmem:[#allocation2] sm:$0xff]  ;;  %v723_v25 = vadd.f32 %v1277_v18, %v700_v23  ;;  %v701_v27 = vld [vmem:[#allocation2 + $0x18] sm:$0xff]  ;;  %v702_v31 = vld [vmem:[#allocation2 + $0x50] sm:$0xff] }
 0x128   : > { %v722_v24 = vadd.f32 %v1277_v18, %v699_v21  ;;  %v740_v28 = vld [vmem:[%s1378_s3 + $0x18] sm:$0xff]  ;;  %v753_v29 = vadd.f32 %v737_v19, %v721_v20  ;;  %v724_v30 = vadd.f32 %v1277_v18, %v701_v27  ;;  %v741_v32 = vld [vmem:[%s1378_s3 + $0x20] sm:$0xff]  ;;  %v725_v36 = vadd.f32 %v1277_v18, %v702_v31  ;;  %v742_v38 = vld [vmem:[%s1378_s3 + $0x28] sm:$0xff] }
 0x129   : > { %v755_v35 = vadd.f32 %v739_v26, %v723_v25  ;;  %v704_v39 = vld [vmem:[#allocation2 + $0x8] sm:$0xff]  ;;  %v743_v40 = vld [vmem:[%s1378_s3 + $0x30] sm:$0xff]  ;;  %v744_v45 = vld [vmem:[%s1378_s3 + $0x38] sm:$0xff] }
 0x12a   : > { %v754_v34 = vadd.f32 %v738_v22, %v722_v24  ;;  %v769_v41 = vmax.f32 %v753_v29, 0.0  ;;  %v756_v42 = vadd.f32 %v740_v28, %v724_v30  ;;  %v727_v43 = vadd.f32 %v1277_v18, %v704_v39  ;;  %v705_v44 = vld [vmem:[#allocation2 + $0x48] sm:$0xff]  ;;  %v706_v46 = vld [vmem:[#allocation2 + $0x40] sm:$0xff]  ;;  %v708_v58 = vld [vmem:[#allocation2 + $0x10] sm:$0xff] }
 0x12b   : > { %v703_v33 = vld [vmem:[#allocation2 + $0x68] sm:$0xff]  ;;  %v771_v48 = vmax.f32 %v755_v35, 0.0  ;;  %v757_v49 = vadd.f32 %v741_v32, %v725_v36  ;;  %v745_v51 = vld [vmem:[%s1378_s3 + $0x40] sm:$0xff]  ;;  %v728_v56 = vadd.f32 %v1277_v18, %v705_v44  ;;  %v729_v57 = vadd.f32 %v1277_v18, %v706_v46  ;;  %v747_v59 = vld [vmem:[%s1378_s3 + $0x50] sm:$0xff] }
 0x12c   : > { %v726_v37 = vadd.f32 %v1277_v18, %v703_v33  ;;  %v770_v47 = vmax.f32 %v754_v34, 0.0  ;;  %v707_v52 = vld [vmem:[#allocation2 + $0x20] sm:$0xff]  ;;  %v746_v53 = vld [vmem:[%s1378_s3 + $0x48] sm:$0xff]  ;;  %785 = vst [vmem:[#allocation4] sm:$0xff] %v769_v41  ;;  %v772_v54 = vmax.f32 %v756_v42, 0.0  ;;  %v759_v55 = vadd.f32 %v743_v40, %v727_v43  ;;  %v709_v60 = vld [vmem:[#allocation2 + $0x38] sm:$0xff] }
 0x12d   : > { %787 = vst [vmem:[#allocation4 + $0x10] sm:$0xff] %v771_v48  ;;  %v773_v61 = vmax.f32 %v757_v49, 0.0  ;;  %v730_v63 = vadd.f32 %v1277_v18, %v707_v52  ;;  %v731_v0 = vadd.f32 %v1277_v18, %v708_v58  ;;  %v748_v1 = vld [vmem:[%s1378_s3 + $0x58] sm:$0xff]  ;;  %v710_v2 = vld [vmem:[#allocation2 + $0x60] sm:$0xff]  ;;  %v760_v5 = vadd.f32 %v744_v45, %v728_v56  ;;  %v711_v8 = vld [vmem:[#allocation2 + $0x70] sm:$0xff] }
 0x12e   : > { %v758_v50 = vadd.f32 %v742_v38, %v726_v37  ;;  %786 = vst [vmem:[#allocation4 + $0x8] sm:$0xff] %v770_v47  ;;  %v749_v3 = vld [vmem:[%s1378_s3 + $0x60] sm:$0xff]  ;;  %788 = vst [vmem:[#allocation4 + $0x18] sm:$0xff] %v772_v54  ;;  %v775_v4 = vmax.f32 %v759_v55, 0.0  ;;  %v761_v6 = vadd.f32 %v745_v51, %v729_v57  ;;  %v732_v7 = vadd.f32 %v1277_v18, %v709_v60  ;;  %v750_v9 = vld [vmem:[%s1378_s3 + $0x68] sm:$0xff] }
 0x12f   : > { %v712_v10 = vld [vmem:[#allocation2 + $0x78] sm:$0xff]  ;;  %789 = vst [vmem:[#allocation4 + $0x20] sm:$0xff] %v773_v61  ;;  %v762_v11 = vadd.f32 %v746_v53, %v730_v63  ;;  %v763_v12 = vadd.f32 %v747_v59, %v731_v0  ;;  %v733_v13 = vadd.f32 %v1277_v18, %v710_v2  ;;  %v734_v14 = vadd.f32 %v1277_v18, %v711_v8  ;;  %v751_v15 = vld [vmem:[%s1378_s3 + $0x70] sm:$0xff]  ;;  %v713_v16 = vld [vmem:[#allocation2 + $0x28] sm:$0xff] }
 0x130   : > { %v774_v62 = vmax.f32 %v758_v50, 0.0  ;;  %791 = vst [vmem:[#allocation4 + $0x30] sm:$0xff] %v775_v4  ;;  %v776_v17 = vmax.f32 %v760_v5, 0.0  ;;  %v777_v19 = vmax.f32 %v761_v6, 0.0  ;;  %v764_v20 = vadd.f32 %v748_v1, %v732_v7  ;;  %v752_v26 = vld [vmem:[%s1378_s3 + $0x78] sm:$0xff] }
 0x131   : > { %v735_v21 = vadd.f32 %v1277_v18, %v712_v10  ;;  %v778_v22 = vmax.f32 %v762_v11, 0.0  ;;  %v779_v23 = vmax.f32 %v763_v12, 0.0  ;;  %v765_v24 = vadd.f32 %v749_v3, %v733_v13 }
 0x132   : > { %790 = vst [vmem:[#allocation4 + $0x28] sm:$0xff] %v774_v62  ;;  %v766_v25 = vadd.f32 %v750_v9, %v734_v14  ;;  %792 = vst [vmem:[#allocation4 + $0x38] sm:$0xff] %v776_v17  ;;  %v780_v27 = vmax.f32 %v764_v20, 0.0  ;;  %v736_v29 = vadd.f32 %v1277_v18, %v713_v16 }
 0x133   : > { %793 = vst [vmem:[#allocation4 + $0x40] sm:$0xff] %v777_v19  ;;  %v767_v28 = vadd.f32 %v751_v15, %v735_v21  ;;  %794 = vst [vmem:[#allocation4 + $0x48] sm:$0xff] %v778_v22  ;;  %v781_v30 = vmax.f32 %v765_v24, 0.0 }
 0x134   : > { %795 = vst [vmem:[#allocation4 + $0x50] sm:$0xff] %v779_v23  ;;  %v782_v31 = vmax.f32 %v766_v25, 0.0  ;;  %796 = vst [vmem:[#allocation4 + $0x58] sm:$0xff] %v780_v27  ;;  %v768_v33 = vadd.f32 %v752_v26, %v736_v29 }
 0x135   : > { %v783_v32 = vmax.f32 %v767_v28, 0.0  ;;  %797 = vst [vmem:[#allocation4 + $0x60] sm:$0xff] %v781_v30 }
 0x136   : > { %798 = vst [vmem:[#allocation4 + $0x68] sm:$0xff] %v782_v31  ;;  %v784_v34 = vmax.f32 %v768_v33, 0.0 }
 0x137   : > { %799 = vst [vmem:[#allocation4 + $0x70] sm:$0xff] %v783_v32 }
 0x138   : > { %800 = vst [vmem:[#allocation4 + $0x78] sm:$0xff] %v784_v34 }
 0x139 PF: > { %p1345_p12 = scmp.eq.s32.totalorder %s922_s20, 8  ;;  %s1155_s9 = smov [#allocation4]  }
 0x13a   : > { %s811_s10 = sshll.u32 %s1155_s9, 4  ;;  %s812_s10 = int_to_ptr.vmem [resolvable:$true] %s811_s10 }
 0x13b   : > { %s1086_s11 = scalar_lea.vmem %s812_s10, 2048  ;;  %p1093_p2 = scmp.lt.s32.totalorder %s812_s10, %s812_s10 }
 0x13c   : > { %p1087_p13 = scmp.ne.s32.totalorder %s812_s10, %s1086_s11  ;;  %p1094_p3 = scmp.lt.s32.totalorder %s1086_s11, %s1086_s11 }
 0x13e   : > { %p1088_p0 = pnand %p1087_p13, %p1345_p12  ;;  %p1095_p4 = por %p1094_p3, %p1093_p2 }
 0x140   : > { %p1089_p1 = pneg %p1088_p0 }
 0x142   : > { %p1096_p5 = pnand %p1095_p4, %p1089_p1 }
 0x144   : > { %1099 = shalt.err (!%p1096_p5)
}
 0x145   : > { %s1156_s12 = smov 128   ;;  %s1157_s20 = smov 8  }
 0x146   : > { %1021 = dma.vmem_to_hbm [thread:$0]  (%p1345_p12), %s812_s10, 2048, %s1379_s4, [#allocation5], %s1156_s12, %s1156_s12, %s1157_s20  }
 0x147   : > { %1131 = dma.done.wait (%p1345_p12), [#allocation5], 2048  }
 0x148   : > { %1133 = vsyncadd (%p1345_p12), [#allocation5], 4294965248 }
 0x149 PF: > { %s15_s19 = sadd.s32 1, %s1152_s19   ;;  %s1381_s15 = smov %s1140_s16 }
 0x14a   : > { %p12_p6 = scmp.ge.s32.totalorder %s15_s19, 11   ;;  %s1382_s16 = smov %s1219_s24 }
 0x14b   : > { %s1383_s17 = smov %s1148_s18  ;;  %s1384_s18 = smov %s1386_s21 }
 0x14c   :  { %14 = sbr.rel (!%p12_p6) target bundleno = 3 (0x3), region = 127 }
 0x151   :  { %827 = vsyncpa [#allocation5], 1 }
 0x152   :  { %829 = vsyncpa [#allocation5 + $0x1], 1 }

// kernel: _lambda_.3
= control target key start
LH: loop header
LB: loop body
LE: loop exit
PB: predicated region body
PF: predicated region fallthrough
CT: control target
= control target key end

     0   :  { %s1049_s12 = smov 0   ;;  %s1051_s13 = smov 0   ;;  %s1205_s0 = inlined_call_operand.vmem [shape: bf16[128,640], index: 0, kind: input, shape index: {}]   ;;  %s1206_s1 = inlined_call_operand.vmem [shape: bf16[640,128], index: 1, kind: input, shape index: {}]   ;;  %s1207_s2 = inlined_call_operand.vmem [shape: f32[1,128], index: 2, kind: input, shape index: {}]   ;;  %s1208_s3 = inlined_call_operand.vmem [shape: f32[128,128], index: 3, kind: output, shape index: {}]  }
   0x1   :  { %s1053_s14 = smov 0   ;;  %s1055_s15 = smov 0  }
   0x2   :  { %s1057_s16 = smov 0  }
   0x3 LB: > { %s25_s17 = sadd.s32 1, %s1022_s15  ;;  %p48_p1 = scmp.ne.s32.totalorder %s1014_s13, %s1010_s12  ;;  %s1026_s16 = sphi %s1057_s16, %s13_s16   ;;  %s1022_s15 = sphi %s1055_s15, %s1212_s15   ;;  %s1018_s14 = sphi %s1053_s14, %s1211_s14   ;;  %s1014_s13 = sphi %s1051_s13, %s1210_s13   ;;  %s1010_s12 = sphi %s1049_s12, %s1209_s12  }
   0x4   : > { %p26_p0 = scmp.ge.s32.totalorder %s25_s17, 5  ;;  %p49_p2 = scmp.eq.s32.totalorder %s1026_s16, 0 }
   0x5   : > { %s41_s19 = sadd.s32 1, %s1014_s13  ;;  %p837_p5 = scmp.ge.s32.totalorder %s1026_s16, 5 }
   0x6   : > { %s1214_s17 = smov (%p26_p0, %s25_s17), 0  ;;  %p50_p3 = por %p49_p2, %p48_p1 }
   0x7   : > { %s37_s18 = ssub.s32 %s1022_s15, %s1214_s17  ;;  %162 = sbr.rel (%p837_p5) target bundleno = 26 (0x1a), region = 20 }
   0x8   : > { %p39_p4 = scmp.eq.s32.totalorder %s37_s18, 0 }
   0xa   : > { %s1084_s20 = scalar_select %p39_p4, %s1014_s13, %s41_s19  }
   0xc   : > { %165 = sbr.rel (!%p50_p3) target bundleno = 26 (0x1a), region = 24  ;;  %s167_s21 = sand.u32 (%p50_p3), 1, %s1014_s13  }
   0xd   : > { %s839_s22 = sshll.u32 (%p50_p3), %s1022_s15, 2  ;;  %s838_s23 = sshll.u32 (%p50_p3), %s167_s21, 6 }
   0xe   : > { %s1092_s26 = scalar_lea.vmem (%p50_p3), %s1205_s0, %s839_s22  ;;  %s169_s27 = scalar_lea.vmem (%p50_p3), [#allocation3], %s838_s23 }
   0xf   : > { %v191_v0 = vld [vmem:[%s1092_s26] sm:$0xf] (%p50_p3)  ;;  %v193_v1 = vld [vmem:[%s1092_s26 + $0x14] sm:$0xf] (%p50_p3)  ;;  %v195_v2 = vld [vmem:[%s1092_s26 + $0x28] sm:$0xf] (%p50_p3) }
  0x10   : > { %192 = vst [vmem:[%s169_s27] sm:$0xf] (%p50_p3), %v191_v0  ;;  %194 = vst [vmem:[%s169_s27 + $0x4] sm:$0xf] (%p50_p3), %v193_v1  ;;  %v197_v3 = vld [vmem:[%s1092_s26 + $0x3c] sm:$0xf] (%p50_p3) }
  0x11   : > { %v199_v4 = vld [vmem:[%s1092_s26 + $0x50] sm:$0xf]  ;;  %196 = vst [vmem:[%s169_s27 + $0x8] sm:$0xf] %v195_v2  ;;  %198 = vst [vmem:[%s169_s27 + $0xc] sm:$0xf] %v197_v3 }
  0x12   : > { %200 = vst [vmem:[%s169_s27 + $0x10] sm:$0xf] %v199_v4  ;;  %v201_v5 = vld [vmem:[%s1092_s26 + $0x64] sm:$0xf]  ;;  %v203_v6 = vld [vmem:[%s1092_s26 + $0x78] sm:$0xf] }
  0x13   : > { %v205_v7 = vld [vmem:[%s1092_s26 + $0x8c] sm:$0xf]  ;;  %202 = vst [vmem:[%s169_s27 + $0x14] sm:$0xf] %v201_v5  ;;  %204 = vst [vmem:[%s169_s27 + $0x18] sm:$0xf] %v203_v6 }
  0x14   : > { %206 = vst [vmem:[%s169_s27 + $0x1c] sm:$0xf] %v205_v7  ;;  %v207_v8 = vld [vmem:[%s1092_s26 + $0xa0] sm:$0xf]  ;;  %v209_v9 = vld [vmem:[%s1092_s26 + $0xb4] sm:$0xf] }
  0x15   : > { %v211_v10 = vld [vmem:[%s1092_s26 + $0xc8] sm:$0xf]  ;;  %208 = vst [vmem:[%s169_s27 + $0x20] sm:$0xf] %v207_v8  ;;  %210 = vst [vmem:[%s169_s27 + $0x24] sm:$0xf] %v209_v9 }
  0x16   : > { %212 = vst [vmem:[%s169_s27 + $0x28] sm:$0xf] %v211_v10  ;;  %v213_v11 = vld [vmem:[%s1092_s26 + $0xdc] sm:$0xf]  ;;  %v215_v12 = vld [vmem:[%s1092_s26 + $0xf0] sm:$0xf] }
  0x17   : > { %v217_v13 = vld [vmem:[%s1092_s26 + $0x104] sm:$0xf]  ;;  %214 = vst [vmem:[%s169_s27 + $0x2c] sm:$0xf] %v213_v11  ;;  %216 = vst [vmem:[%s169_s27 + $0x30] sm:$0xf] %v215_v12 }
  0x18   : > { %218 = vst [vmem:[%s169_s27 + $0x34] sm:$0xf] %v217_v13  ;;  %v219_v14 = vld [vmem:[%s1092_s26 + $0x118] sm:$0xf]  ;;  %v221_v15 = vld [vmem:[%s1092_s26 + $0x12c] sm:$0xf] }
  0x19   : > { %220 = vst [vmem:[%s169_s27 + $0x38] sm:$0xf] %v219_v14  ;;  %222 = vst [vmem:[%s169_s27 + $0x3c] sm:$0xf] %v221_v15 }
  0x1a PF: > { %p840_p6 = scmp.ge.s32.totalorder %s1026_s16, 1  ;;  %p289_p7 = scmp.lt.s32.totalorder %s1026_s16, 6 }
  0x1c   : > { %p290_p8 = pnand %p840_p6, %p289_p7 }
  0x1d   : > { %s296_s28 = sand.u32 (!%p290_p8), 1, %s1010_s12   ;;  %s842_s29 = sshll.u32 (!%p290_p8), %s1018_s14, 4 }
  0x1e   : > { %293 = sbr.rel (%p290_p8) target bundleno = 305 (0x131), region = 69  ;;  %s841_s30 = sshll.u32 (!%p290_p8), %s296_s28, 6 }
  0x1f   : > { %p335_p9 = scmp.lt.s32.totalorder (!%p290_p8), %s842_s29, 79  ;;  %s1119_s8 = scalar_lea.vmem (!%p290_p8), [#allocation3], %s841_s30 }
  0x20   : > { %p844_p10 = scmp.ne.s32.totalorder (!%p290_p8), %s1018_s14, 0 }
  0x23   : > { %s1216_s29 = smov (!%p335_p9, %s842_s29), 79  ;;  %359 = sbr.rel (%p844_p10) target bundleno = 49 (0x31), region = 77 }
  0x24   : > { %s843_s4 = sshll.u32 %s1216_s29, 2 }
  0x25   : > { %s1117_s7 = scalar_lea.vmem %s1206_s1, %s843_s4 }
  0x28   : > { %v1028_v16 = vmov 0.0  }
  0x29   : > { %360 = vst [vmem:[#allocation2 + $0x30] sm:$0xff] %v1028_v16  ;;  %361 = vst [vmem:[#allocation2] sm:$0xff] %v1028_v16 }
  0x2a   : > { %362 = vst [vmem:[#allocation2 + $0x58] sm:$0xff] %v1028_v16  ;;  %363 = vst [vmem:[#allocation2 + $0x18] sm:$0xff] %v1028_v16 }
  0x2b   : > { %364 = vst [vmem:[#allocation2 + $0x50] sm:$0xff] %v1028_v16  ;;  %365 = vst [vmem:[#allocation2 + $0x68] sm:$0xff] %v1028_v16 }
  0x2c   : > { %366 = vst [vmem:[#allocation2 + $0x8] sm:$0xff] %v1028_v16  ;;  %367 = vst [vmem:[#allocation2 + $0x48] sm:$0xff] %v1028_v16 }
  0x2d   : > { %368 = vst [vmem:[#allocation2 + $0x40] sm:$0xff] %v1028_v16  ;;  %369 = vst [vmem:[#allocation2 + $0x20] sm:$0xff] %v1028_v16 }
  0x2e   : > { %370 = vst [vmem:[#allocation2 + $0x10] sm:$0xff] %v1028_v16  ;;  %371 = vst [vmem:[#allocation2 + $0x38] sm:$0xff] %v1028_v16 }
  0x2f   : > { %372 = vst [vmem:[#allocation2 + $0x60] sm:$0xff] %v1028_v16  ;;  %373 = vst [vmem:[#allocation2 + $0x70] sm:$0xff] %v1028_v16 }
  0x30   : > { %374 = vst [vmem:[#allocation2 + $0x78] sm:$0xff] %v1028_v16  ;;  %375 = vst [vmem:[#allocation2 + $0x28] sm:$0xff] %v1028_v16 }
  0x31 PF: > { %v972_v17 = vld [vmem:[%s1117_s7 + $0x38] sm:$0xff]   ;;  %v973_v18 = vld [vmem:[%s1117_s7 + $0x30] sm:$0xff]   ;;  %v974_v19 = vld [vmem:[%s1117_s7 + $0x28] sm:$0xff]   ;;  %p861_p11 = scmp.ne.s32.totalorder %s1018_s14, 4 }
  0x32   : > { %883 = vmatprep.subr.bf16.mxu0 %v972_v17  ;;  %915 = vmatprep.subr.bf16.mxu1 %v972_v17  ;;  %v975_v20 = vld [vmem:[%s1117_s7 + $0x20] sm:$0xff]   ;;  %v976_v23 = vld [vmem:[%s1117_s7 + $0x18] sm:$0xff]   ;;  %v977_v24 = vld [vmem:[%s1117_s7 + $0x10] sm:$0xff]  }
  0x33   : > { %884 = vmatpush3.bf16.msra.mxu0 %v972_v17  ;;  %923 = vmatpush3.bf16.msra.mxu1 %v972_v17  ;;  %v980_v21 = vld [vmem:[%s1119_s8] sm:$0xff]   ;;  %v978_v25 = vld [vmem:[%s1117_s7 + $0x8] sm:$0xff]   ;;  %v984_v29 = vld [vmem:[%s1119_s8 + $0x10] sm:$0xff]  }
  0x34   : > { %885 = vmatprep.subr.bf16.mxu0 %v973_v18  ;;  %916 = vmatprep.subr.bf16.mxu1 %v973_v18  ;;  %v981_v22 = vld [vmem:[%s1119_s8 + $0x20] sm:$0xff]   ;;  %v982_v27 = vld [vmem:[%s1119_s8 + $0x8] sm:$0xff]   ;;  %v985_v30 = vld [vmem:[%s1119_s8 + $0x30] sm:$0xff]  }
  0x35   : > { %899 = vmatprep.mubr.bf16.mxu0 %v980_v21  ;;  %907 = vmatprep.mubr.bf16.mxu1 %v981_v22  ;;  %v979_v26 = vld [vmem:[%s1117_s7] sm:$0xff]   ;;  %v983_v28 = vld [vmem:[%s1119_s8 + $0x28] sm:$0xff]   ;;  %v986_v31 = vld [vmem:[%s1119_s8 + $0x18] sm:$0xff]  }
  0x36   : > { %v987_v32 = vld [vmem:[%s1119_s8 + $0x38] sm:$0xff]   ;;  %v386_v34 = vld [vmem:[#allocation2 + $0x10] sm:$0xff]  ;;  %v384_v38 = vld [vmem:[#allocation2 + $0x40] sm:$0xff] }
  0x37   : > { %886 = vmatpush3.bf16.msra.mxu0 %v973_v18  ;;  %924 = vmatpush3.bf16.msra.mxu1 %v973_v18  ;;  %v378_v33 = vld [vmem:[#allocation2 + $0x58] sm:$0xff]  ;;  %v376_v37 = vld [vmem:[#allocation2 + $0x30] sm:$0xff]  ;;  %v377_v49 = vld [vmem:[#allocation2] sm:$0xff] }
  0x38   : > { %887 = vmatprep.subr.bf16.mxu0 %v974_v19  ;;  %917 = vmatprep.subr.bf16.mxu1 %v974_v19  ;;  %v379_v43 = vld [vmem:[#allocation2 + $0x18] sm:$0xff]  ;;  %v385_v50 = vld [vmem:[#allocation2 + $0x20] sm:$0xff]  ;;  %v382_v55 = vld [vmem:[#allocation2 + $0x8] sm:$0xff] }
  0x39   : > { %v387_v44 = vld [vmem:[#allocation2 + $0x38] sm:$0xff]  ;;  %v380_v61 = vld [vmem:[#allocation2 + $0x50] sm:$0xff]  ;;  %v388_v62 = vld [vmem:[#allocation2 + $0x60] sm:$0xff] }
  0x3a   : > { %v390_v56 = vld [vmem:[#allocation2 + $0x78] sm:$0xff]  ;;  %v383_v3 = vld [vmem:[#allocation2 + $0x48] sm:$0xff]  ;;  %v389_v10 = vld [vmem:[#allocation2 + $0x70] sm:$0xff] }
  0x3b   : > { %888 = vmatpush3.bf16.msra.mxu0 %v974_v19  ;;  %925 = vmatpush3.bf16.msra.mxu1 %v974_v19  ;;  %v391_v4 = vld [vmem:[#allocation2 + $0x28] sm:$0xff] }
  0x3c   : > { %889 = vmatprep.subr.bf16.mxu0 %v975_v20  ;;  %918 = vmatprep.subr.bf16.mxu1 %v975_v20  ;;  %v381_v9 = vld [vmem:[#allocation2 + $0x68] sm:$0xff] }
  0x3f   : > { %890 = vmatpush3.bf16.msra.mxu0 %v975_v20  ;;  %926 = vmatpush3.bf16.msra.mxu1 %v975_v20 }
  0x40   : > { %891 = vmatprep.subr.bf16.mxu0 %v976_v23  ;;  %919 = vmatprep.subr.bf16.mxu1 %v976_v23 }
  0x43   : > { %892 = vmatpush3.bf16.msra.mxu0 %v976_v23  ;;  %927 = vmatpush3.bf16.msra.mxu1 %v976_v23 }
  0x44   : > { %893 = vmatprep.subr.bf16.mxu0 %v977_v24  ;;  %920 = vmatprep.subr.bf16.mxu1 %v977_v24 }
  0x47   : > { %894 = vmatpush3.bf16.msra.mxu0 %v977_v24  ;;  %928 = vmatpush3.bf16.msra.mxu1 %v977_v24 }
  0x48   : > { %895 = vmatprep.subr.bf16.mxu0 %v978_v25  ;;  %921 = vmatprep.subr.bf16.mxu1 %v978_v25 }
  0x4b   : > { %896 = vmatpush3.bf16.msra.mxu0 %v978_v25  ;;  %929 = vmatpush3.bf16.msra.mxu1 %v978_v25 }
  0x4c   : > { %897 = vmatprep.subr.bf16.mxu0 %v979_v26  ;;  %922 = vmatprep.subr.bf16.mxu1 %v979_v26 }
  0x4f   : > { %898 = vmatpush3.bf16.msra.mxu0 %v979_v26  ;;  %930 = vmatpush3.bf16.msra.mxu1 %v979_v26 }
  0x52   : > { %900 = vmatmul.mubr.bf16.vlgmr.msra.gmra.mxu0 %v982_v27  ;;  %908 = vmatmul.mubr.bf16.vlgmr.msra.gmra.mxu1 %v983_v28 }
  0x53   : > { %903 = vmatprep.mubr.bf16.mxu0 %v984_v29  ;;  %911 = vmatprep.mubr.bf16.mxu1 %v985_v30 }
  0x5a   : > { %904 = vmatmul.mubr.bf16.gmra.mxu0 %v986_v31  ;;  %912 = vmatmul.mubr.bf16.gmra.mxu1 %v987_v32 }
 0x112   : > { %v901_v35 = vpop.f32.mrf.mxu0  ;;  %v909_v36 = vpop.f32.mrf.mxu1 }
 0x113   : > { %v619_v39 = vadd.f32 %v901_v35, %v378_v33  ;;  %v627_v40 = vadd.f32 %v909_v36, %v386_v34 }
 0x114   : > { %v554_v41 = vpop.f32.mrf.mxu0  ;;  %v586_v42 = vpop.f32.mrf.mxu1 }
 0x115   : > { %635 = vst [vmem:[#allocation2 + $0x58] sm:$0xff] %v619_v39  ;;  %643 = vst [vmem:[#allocation2 + $0x10] sm:$0xff] %v627_v40  ;;  %v617_v45 = vadd.f32 %v554_v41, %v376_v37  ;;  %v625_v46 = vadd.f32 %v586_v42, %v384_v38 }
 0x116   : > { %v902_v47 = vpop.f32.mrf.mxu0  ;;  %v910_v48 = vpop.f32.mrf.mxu1 }
 0x117   : > { %633 = vst [vmem:[#allocation2 + $0x30] sm:$0xff] %v617_v45  ;;  %641 = vst [vmem:[#allocation2 + $0x40] sm:$0xff] %v625_v46  ;;  %v620_v51 = vadd.f32 %v902_v47, %v379_v43  ;;  %v628_v52 = vadd.f32 %v910_v48, %v387_v44 }
 0x118   : > { %v557_v53 = vpop.f32.mrf.mxu0  ;;  %v589_v54 = vpop.f32.mrf.mxu1 }
 0x119   : > { %636 = vst [vmem:[#allocation2 + $0x18] sm:$0xff] %v620_v51  ;;  %644 = vst [vmem:[#allocation2 + $0x38] sm:$0xff] %v628_v52  ;;  %v618_v57 = vadd.f32 %v557_v53, %v377_v49  ;;  %v626_v58 = vadd.f32 %v589_v54, %v385_v50 }
 0x11a   : > { %v905_v59 = vpop.f32.mrf.mxu0  ;;  %v913_v60 = vpop.f32.mrf.mxu1 }
 0x11b   : > { %634 = vst [vmem:[#allocation2] sm:$0xff] %v618_v57  ;;  %642 = vst [vmem:[#allocation2 + $0x20] sm:$0xff] %v626_v58  ;;  %v623_v63 = vadd.f32 %v905_v59, %v382_v55  ;;  %v631_v0 = vadd.f32 %v913_v60, %v390_v56 }
 0x11c   : > { %v570_v1 = vpop.f32.mrf.mxu0  ;;  %v602_v2 = vpop.f32.mrf.mxu1 }
 0x11d   : > { %639 = vst [vmem:[#allocation2 + $0x8] sm:$0xff] %v623_v63  ;;  %647 = vst [vmem:[#allocation2 + $0x78] sm:$0xff] %v631_v0  ;;  %v621_v5 = vadd.f32 %v570_v1, %v380_v61  ;;  %v629_v6 = vadd.f32 %v602_v2, %v388_v62 }
 0x11e   : > { %v906_v7 = vpop.f32.mrf.mxu0  ;;  %v914_v8 = vpop.f32.mrf.mxu1 }
 0x11f   : > { %637 = vst [vmem:[#allocation2 + $0x50] sm:$0xff] %v621_v5  ;;  %645 = vst [vmem:[#allocation2 + $0x60] sm:$0xff] %v629_v6  ;;  %v624_v11 = vadd.f32 %v906_v7, %v383_v3  ;;  %v632_v12 = vadd.f32 %v914_v8, %v391_v4  ;;  %652 = sbr.rel (%p861_p11) target bundleno = 305 (0x131), region = 81 }
 0x120   : > { %v573_v13 = vpop.f32.mrf.mxu0  ;;  %v605_v14 = vpop.f32.mrf.mxu1 }
 0x121   : > { %640 = vst [vmem:[#allocation2 + $0x48] sm:$0xff] %v624_v11  ;;  %648 = vst [vmem:[#allocation2 + $0x28] sm:$0xff] %v632_v12  ;;  %v622_v15 = vadd.f32 %v573_v13, %v381_v9  ;;  %v630_v16 = vadd.f32 %v605_v14, %v389_v10 }
 0x123   : > { %638 = vst [vmem:[#allocation2 + $0x68] sm:$0xff] %v622_v15  ;;  %646 = vst [vmem:[#allocation2 + $0x70] sm:$0xff] %v630_v16 }
 0x124   : > { %v653_v17 = vld [vmem:[#allocation2 + $0x30] sm:$0xff]  ;;  %v862_v18 = vld [vmem:[%s1207_s2] ss:$0 sm:$0xff]  ;;  %v655_v22 = vld [vmem:[#allocation2 + $0x58] sm:$0xff] }
 0x125   : > { %v654_v19 = vld [vmem:[#allocation2] sm:$0xff]  ;;  %v676_v20 = vadd.f32 %v862_v18, %v653_v17  ;;  %v656_v23 = vld [vmem:[#allocation2 + $0x18] sm:$0xff]  ;;  %v678_v25 = vadd.f32 %v862_v18, %v655_v22  ;;  %v659_v29 = vld [vmem:[#allocation2 + $0x8] sm:$0xff] }
 0x126   : > { %v677_v21 = vadd.f32 %v862_v18, %v654_v19  ;;  %v657_v24 = vld [vmem:[#allocation2 + $0x50] sm:$0xff]  ;;  %v679_v26 = vadd.f32 %v862_v18, %v656_v23  ;;  %v682_v34 = vadd.f32 %v862_v18, %v659_v29  ;;  %v661_v35 = vld [vmem:[#allocation2 + $0x40] sm:$0xff]  ;;  %v664_v42 = vld [vmem:[#allocation2 + $0x38] sm:$0xff] }
 0x127   : > { %v680_v27 = vadd.f32 %v862_v18, %v657_v24  ;;  %v692_v31 = vmax.f32 %v676_v20, 0.0  ;;  %v662_v36 = vld [vmem:[#allocation2 + $0x20] sm:$0xff]  ;;  %v663_v37 = vld [vmem:[#allocation2 + $0x10] sm:$0xff]  ;;  %v694_v38 = vmax.f32 %v678_v25, 0.0  ;;  %v684_v47 = vadd.f32 %v862_v18, %v661_v35  ;;  %v667_v49 = vld [vmem:[#allocation2 + $0x78] sm:$0xff] }
 0x128   : > { %v660_v30 = vld [vmem:[#allocation2 + $0x48] sm:$0xff]  ;;  %v693_v32 = vmax.f32 %v677_v21, 0.0  ;;  %v695_v39 = vmax.f32 %v679_v26, 0.0  ;;  %v665_v43 = vld [vmem:[#allocation2 + $0x60] sm:$0xff]  ;;  %v698_v46 = vmax.f32 %v682_v34, 0.0  ;;  %v685_v48 = vadd.f32 %v862_v18, %v662_v36 }
 0x129   : > { %v696_v40 = vmax.f32 %v680_v27, 0.0  ;;  %v683_v41 = vadd.f32 %v862_v18, %v660_v30  ;;  %708 = vst [vmem:[%s1208_s3] sm:$0xff] %v692_v31  ;;  %v668_v50 = vld [vmem:[#allocation2 + $0x28] sm:$0xff]  ;;  %710 = vst [vmem:[%s1208_s3 + $0x10] sm:$0xff] %v694_v38  ;;  %v686_v52 = vadd.f32 %v862_v18, %v663_v37  ;;  %v687_v53 = vadd.f32 %v862_v18, %v664_v42 }
 0x12a   : > { %v658_v28 = vld [vmem:[#allocation2 + $0x68] sm:$0xff]  ;;  %v666_v44 = vld [vmem:[#allocation2 + $0x70] sm:$0xff]  ;;  %709 = vst [vmem:[%s1208_s3 + $0x8] sm:$0xff] %v693_v32  ;;  %711 = vst [vmem:[%s1208_s3 + $0x18] sm:$0xff] %v695_v39  ;;  %v688_v54 = vadd.f32 %v862_v18, %v665_v43  ;;  %v700_v55 = vmax.f32 %v684_v47, 0.0  ;;  %v701_v56 = vmax.f32 %v685_v48, 0.0  ;;  %v690_v58 = vadd.f32 %v862_v18, %v667_v49 }
 0x12b   : > { %v681_v33 = vadd.f32 %v862_v18, %v658_v28  ;;  %712 = vst [vmem:[%s1208_s3 + $0x20] sm:$0xff] %v696_v40  ;;  %v699_v51 = vmax.f32 %v683_v41, 0.0  ;;  %714 = vst [vmem:[%s1208_s3 + $0x30] sm:$0xff] %v698_v46  ;;  %v689_v57 = vadd.f32 %v862_v18, %v666_v44  ;;  %v702_v59 = vmax.f32 %v686_v52, 0.0 }
 0x12c   : > { %v703_v60 = vmax.f32 %v687_v53, 0.0  ;;  %v704_v61 = vmax.f32 %v688_v54, 0.0  ;;  %v691_v62 = vadd.f32 %v862_v18, %v668_v50  ;;  %716 = vst [vmem:[%s1208_s3 + $0x40] sm:$0xff] %v700_v55  ;;  %717 = vst [vmem:[%s1208_s3 + $0x48] sm:$0xff] %v701_v56  ;;  %v706_v0 = vmax.f32 %v690_v58, 0.0 }
 0x12d   : > { %v697_v45 = vmax.f32 %v681_v33, 0.0  ;;  %715 = vst [vmem:[%s1208_s3 + $0x38] sm:$0xff] %v699_v51  ;;  %v705_v63 = vmax.f32 %v689_v57, 0.0  ;;  %718 = vst [vmem:[%s1208_s3 + $0x50] sm:$0xff] %v702_v59 }
 0x12e   : > { %719 = vst [vmem:[%s1208_s3 + $0x58] sm:$0xff] %v703_v60  ;;  %720 = vst [vmem:[%s1208_s3 + $0x60] sm:$0xff] %v704_v61  ;;  %v707_v1 = vmax.f32 %v691_v62, 0.0 }
 0x12f   : > { %713 = vst [vmem:[%s1208_s3 + $0x28] sm:$0xff] %v697_v45  ;;  %721 = vst [vmem:[%s1208_s3 + $0x68] sm:$0xff] %v705_v63 }
 0x130   : > { %722 = vst [vmem:[%s1208_s3 + $0x70] sm:$0xff] %v706_v0  ;;  %723 = vst [vmem:[%s1208_s3 + $0x78] sm:$0xff] %v707_v1 }
 0x131 PF: > { %s13_s16 = sadd.s32 1, %s1026_s16   ;;  %s1209_s12 = smov %s1014_s13 }
 0x132   : > { %p10_p12 = scmp.ge.s32.totalorder %s13_s16, 7   ;;  %s1210_s13 = smov %s1084_s20 }
 0x133   : > { %s1211_s14 = smov %s1022_s15  ;;  %s1212_s15 = smov %s1214_s17 }
 0x134   :  { %12 = sbr.rel (!%p10_p12) target bundleno = 3 (0x3), region = 122 }

</bundles_post_ra>
